<compile_context>
chip_gen: v7x
topology: tpu7x:2x2x1
jax: 0.10.0
libtpu: 0.0.40
codegen_flags: <defaults>
</compile_context>

<pallas_src>
import jax
import jax.numpy as jnp
from jax.experimental import pallas as pl
from jax.experimental.pallas import tpu as pltpu

NBIT_W = 4          # name_w == 'dorefa'
NBIT_A = 4          # name_a == 'dorefa'
BN_EPS = 1e-5
LANE = 128


# ----------------------------- fused conv kernel -----------------------------
def _make_conv3x3_kernel(H, W, cin, cout, *, n_act, in_is_codes, has_residual,
                         apply_relu, emit_codes):
    """3x3 conv (stride 1, pad 1) + folded BN (+ residual) (+ ReLU) (+ requant).

    The 3x3 gather happens in-kernel: 9 shifted (H*W, cin) x (cin, cout) bf16
    MXU dots accumulated in fp32.  Operands are exact DoReFa integer codes; the
    quantization divisor is pre-folded into the BN scale on the host.
    """

    def kernel(*refs):
        if has_residual:
            x_ref, w_ref, s_ref, b_ref, r_ref, o_ref = refs
        else:
            x_ref, w_ref, s_ref, b_ref, o_ref = refs

        x = x_ref[0].astype(jnp.float32)          # (H+2, W+2, cin), zero-padded
        if in_is_codes:
            codes = x                              # already integer DoReFa codes
        else:
            # DoReFa activation quantization -> integer codes (done ONCE, not 9x)
            codes = jnp.round(jnp.clip(x, 0.0, 1.0) * n_act)

        acc = jnp.zeros((H * W, cout), jnp.float32)
        for dh in range(3):
            for dw in range(3):
                patch = codes[dh:dh + H, dw:dw + W, :].reshape(H * W, cin)
                acc = acc + jnp.dot(patch.astype(jnp.bfloat16),
                                    w_ref[3 * dh + dw],
                                    preferred_element_type=jnp.float32)

        y = acc * s_ref[...] + b_ref[...]          # folded BN (incl. quant scale)
        if has_residual:
            y = y + r_ref[0].reshape(H * W, cout)
        if apply_relu:
            y = jnp.maximum(y, 0.0)
        if emit_codes:
            # next conv's DoReFa activation quantization, emitted as bf16 codes
            y = jnp.round(jnp.clip(y, 0.0, 1.0) * n_act)
        o_ref[...] = y.reshape(1, H, W, cout).astype(o_ref.dtype)

    return kernel


def quan_conv3x3_bn(x_pad, w_codes, scale_eff, bias, *, n_act, in_is_codes,
                    residual=None, apply_relu=True, emit_codes=False,
                    out_dtype=jnp.float32):
    """One QuanConv3x3 + BN (+res) (+ReLU) stage as a single pallas_call.

    x_pad    : (N, H+2, W+2, cin)  spatially zero-padded activations
    w_codes  : (9, cin, cout)      bf16 integer weight codes, tap index = 3*dh+dw
    scale_eff, bias : (cout,)      folded BN scale (incl. quant divisor) / bias
    residual : (N, H, W, cout)     optional f32 residual (already channel-padded)
    """
    n, hp, wp, cin = x_pad.shape
    H, W = hp - 2, wp - 2
    cout = w_codes.shape[-1]

    kernel = _make_conv3x3_kernel(
        H, W, cin, cout, n_act=n_act, in_is_codes=in_is_codes,
        has_residual=residual is not None, apply_relu=apply_relu,
        emit_codes=emit_codes)

    in_specs = [
        pl.BlockSpec((1, hp, wp, cin), lambda i: (i, 0, 0, 0)),   # one image/step
        pl.BlockSpec((9, cin, cout), lambda i: (0, 0, 0)),        # resident weights
        pl.BlockSpec((1, cout), lambda i: (0, 0)),                # folded BN scale
        pl.BlockSpec((1, cout), lambda i: (0, 0)),                # folded BN bias
    ]
    args = [x_pad, w_codes,
            scale_eff.reshape(1, cout).astype(jnp.float32),
            bias.reshape(1, cout).astype(jnp.float32)]
    if residual is not None:
        in_specs.append(pl.BlockSpec((1, H, W, cout), lambda i: (i, 0, 0, 0)))
        args.append(residual)

    return pl.pallas_call(
        kernel,
        out_shape=jax.ShapeDtypeStruct((n, H, W, cout), out_dtype),
        grid=(n,),
        in_specs=in_specs,
        out_specs=pl.BlockSpec((1, H, W, cout), lambda i: (i, 0, 0, 0)),
        compiler_params=pltpu.CompilerParams(
            dimension_semantics=("parallel",)),    # v7x: batch split over 2 TCs
    )(*args)


# ----------------------------- the module ------------------------------------
class QuanBasicCellPallas:
    expansion = 1

    def __init__(self, in_planes, planes, nbit_w=NBIT_W, nbit_a=NBIT_A,
                 stride=1, downsample=None, key=None):
        # TODO(synk): downsample (1x1 conv + BN on the residual) and stride>1
        # are not implemented; this instance uses the identity residual.
        assert downsample is None and stride == 1 and in_planes == planes
        # TODO(synk): 32-bit (unquantized) DoReFa path not implemented.
        assert nbit_w < 32 and nbit_a < 32
        if key is None:
            key = jax.random.PRNGKey(0)
        k1, k2, k3, k4 = jax.random.split(key, 4)
        self.in_planes, self.planes = in_planes, planes
        self.nbit_w, self.nbit_a, self.stride = nbit_w, nbit_a, stride

        # conv weights, PyTorch layout (Cout, Cin, 3, 3), bias=False
        self.w1 = jax.random.normal(k1, (planes, in_planes, 3, 3),
                                    jnp.float32) / jnp.sqrt(9.0 * in_planes)
        self.w2 = jax.random.normal(k2, (planes, planes, 3, 3),
                                    jnp.float32) / jnp.sqrt(9.0 * planes)

        # BatchNorm2d parameters; applied in inference mode (running stats)
        # and folded into per-channel scale/bias.
        # TODO(synk): training-mode batch statistics not implemented.
        b1 = jax.random.normal(k3, (4, planes), jnp.float32)
        b2 = jax.random.normal(k4, (4, planes), jnp.float32)
        self.gamma1, self.beta1 = 1.0 + 0.1 * b1[0], 0.1 * b1[1]
        self.mean1, self.var1 = 0.1 * b1[2], 1.0 + 0.2 * jnp.abs(b1[3])
        self.gamma2, self.beta2 = 1.0 + 0.1 * b2[0], 0.1 * b2[1]
        self.mean2, self.var2 = 0.1 * b2[2], 1.0 + 0.2 * jnp.abs(b2[3])

    # -------- parameter preparation (host-side glue, cheap) ------------------
    def _weight_codes(self, w):
        """DoReFa weight quantization as exact integer codes -> (9, Cin, Cout) bf16."""
        n = float(2 ** self.nbit_w - 1)
        tw = jnp.tanh(w)
        wn = tw / (2.0 * jnp.max(jnp.abs(tw))) + 0.5      # in [0, 1]
        codes = 2.0 * jnp.round(wn * n) - n               # odd ints in [-n, n]
        codes = jnp.transpose(codes, (2, 3, 1, 0))        # (kh, kw, Cin, Cout)
        return codes.reshape(9, w.shape[1], w.shape[0]).astype(jnp.bfloat16)

    def _fold_bn(self, gamma, beta, mean, var):
        """Inference BN folded to scale/bias; quantization divisor folded in."""
        s = gamma / jnp.sqrt(var + BN_EPS)
        n_a = float(2 ** self.nbit_a - 1)
        n_w = float(2 ** self.nbit_w - 1)
        return s / (n_a * n_w), beta - mean * s

    def __call__(self, x_nchw):
        x = jnp.transpose(x_nchw, (0, 2, 3, 1)).astype(jnp.float32)   # NHWC
        planes = self.planes
        cout_p = -(-planes // LANE) * LANE         # lane-dense output channels
        n_a = float(2 ** self.nbit_a - 1)

        w1c = self._weight_codes(self.w1)                              # (9, Cin, P)
        w2c = jnp.pad(self._weight_codes(self.w2),                     # (9, P, Pp)
                      ((0, 0), (0, 0), (0, cout_p - planes)))
        s1, b1 = self._fold_bn(self.gamma1, self.beta1, self.mean1, self.var1)
        s2, b2 = self._fold_bn(self.gamma2, self.beta2, self.mean2, self.var2)
        s2 = jnp.pad(s2, (0, cout_p - planes))
        b2 = jnp.pad(b2, (0, cout_p - planes))

        # stage 1: quant(x) -> conv1 -> bn1 -> relu -> quant   (bf16 codes out)
        x_pad = jnp.pad(x, ((0, 0), (1, 1), (1, 1), (0, 0)))
        codes1 = quan_conv3x3_bn(x_pad, w1c, s1, b1, n_act=n_a,
                                 in_is_codes=False, residual=None,
                                 apply_relu=True, emit_codes=True,
                                 out_dtype=jnp.bfloat16)

        # stage 2: conv2 -> bn2 -> + residual -> relu  (lane-dense padded out)
        codes1_pad = jnp.pad(codes1, ((0, 0), (1, 1), (1, 1), (0, 0)))
        res_pad = jnp.pad(x, ((0, 0), (0, 0), (0, 0), (0, cout_p - planes)))
        out = quan_conv3x3_bn(codes1_pad, w2c, s2, b2, n_act=n_a,
                              in_is_codes=True, residual=res_pad,
                              apply_relu=True, emit_codes=False,
                              out_dtype=jnp.float32)

        out = out[..., :planes]                            # drop channel padding
        return jnp.transpose(out, (0, 3, 1, 2))            # back to NCHW


# ----------------------------- fp32 reference (self-check) -------------------
def reference_cell(cell, x_nchw):
    """Pure-JAX fp32 reference matching the PyTorch QuanBasicCell forward."""
    n_a = float(2 ** cell.nbit_a - 1)
    n_w = float(2 ** cell.nbit_w - 1)

    def quant_a(v):
        return jnp.round(jnp.clip(v, 0.0, 1.0) * n_a) / n_a

    def quant_w(wt):
        tw = jnp.tanh(wt)
        wn = tw / (2.0 * jnp.max(jnp.abs(tw))) + 0.5
        return 2.0 * (jnp.round(wn * n_w) / n_w) - 1.0

    def conv(v, wt):
        return jax.lax.conv_general_dilated(
            v, wt, window_strides=(1, 1), padding=((1, 1), (1, 1)),
            dimension_numbers=("NCHW", "OIHW", "NCHW"),
            precision=jax.lax.Precision.HIGHEST)

    def bn(v, gamma, beta, mean, var):
        s = gamma / jnp.sqrt(var + BN_EPS)
        return v * s[None, :, None, None] + (beta - mean * s)[None, :, None, None]

    out = conv(quant_a(x_nchw), quant_w(cell.w1))
    out = jnp.maximum(bn(out, cell.gamma1, cell.beta1, cell.mean1, cell.var1), 0.0)
    out = conv(quant_a(out), quant_w(cell.w2))
    out = bn(out, cell.gamma2, cell.beta2, cell.mean2, cell.var2) + x_nchw
    return jnp.maximum(out, 0.0)


if __name__ == "__main__":
    key = jax.random.PRNGKey(0)
    kx, kcell = jax.random.split(key)
    N, C, H, W = 2, 8, 16, 16                   # in_planes == planes == 8
    x = jax.random.normal(kx, (N, C, H, W), jnp.float32)

    cell = QuanBasicCellPallas(in_planes=C, planes=C, stride=1,
                               downsample=None, key=kcell)
    y = cell(x)
    jax.block_until_ready(y)

    assert y.shape == (N, C, H, W)
    assert bool(jnp.all(jnp.isfinite(y)))
    assert bool(jnp.all(y >= 0.0))              # final ReLU

    # numerical self-check against a pure-JAX fp32 reference (robust norm so a
    # rare DoReFa rounding-boundary flip between fp32/exact paths can't trip it)
    y_ref = reference_cell(cell, x)
    num = jnp.sqrt(jnp.sum((y - y_ref) ** 2))
    den = jnp.sqrt(jnp.sum(y_ref ** 2)) + 1e-6
    assert float(num / den) < 2e-2, f"rel_err={float(num / den):.3e}"

    print("KERNEL_OK")
</pallas_src>

<mosaic_0001>
module attributes {stable_mosaic.version = 11 : i64} {
  func.func @kernel(%arg0: i32, %arg1: memref<1x18x18x8xf32, #tpu.memory_space<vmem>>, %arg2: memref<9x8x8xbf16, #tpu.memory_space<vmem>>, %arg3: memref<1x8xf32, #tpu.memory_space<vmem>>, %arg4: memref<1x8xf32, #tpu.memory_space<vmem>>, %arg5: memref<1x16x16x8xbf16, #tpu.memory_space<vmem>>) attributes {dimension_semantics = [#tpu.dimension_semantics<parallel>], iteration_bounds = array<i64: 2>, scalar_prefetch = 0 : i64, scratch_operands = 0 : i64, tpu.core_type = #tpu.core_type<tc>, window_params = [{transform_indices = @transform_0, window_bounds = array<i64: 1, 18, 18, 8>}, {pipeline_mode = #tpu.pipeline_mode<synchronous>, transform_indices = @transform_1, window_bounds = array<i64: 9, 8, 8>}, {pipeline_mode = #tpu.pipeline_mode<synchronous>, transform_indices = @transform_2, window_bounds = array<i64: 1, 8>}, {pipeline_mode = #tpu.pipeline_mode<synchronous>, transform_indices = @transform_3, window_bounds = array<i64: 1, 8>}, {transform_indices = @transform_4, window_bounds = array<i64: 1, 16, 16, 8>}]} {
    %c0 = arith.constant 0 : index
    %c0_0 = arith.constant 0 : index
    %c0_1 = arith.constant 0 : index
    %c0_2 = arith.constant 0 : index
    %0 = vector.load %arg1[%c0, %c0_0, %c0_1, %c0_2] : memref<1x18x18x8xf32, #tpu.memory_space<vmem>>, vector<1x18x18x8xf32>
    %1 = vector.shape_cast %0 : vector<1x18x18x8xf32> to vector<18x18x8xf32>
    %cst = arith.constant 0.000000e+00 : f32
    %cst_3 = arith.constant 1.000000e+00 : f32
    %2 = vector.broadcast %cst : f32 to vector<18x18x8xf32>
    %3 = arith.maximumf %2, %1 : vector<18x18x8xf32>
    %4 = vector.broadcast %cst_3 : f32 to vector<18x18x8xf32>
    %5 = arith.minimumf %4, %3 : vector<18x18x8xf32>
    %cst_4 = arith.constant 1.500000e+01 : f32
    %6 = vector.broadcast %cst_4 : f32 to vector<18x18x8xf32>
    %7 = arith.mulf %5, %6 : vector<18x18x8xf32>
    %8 = math.roundeven %7 : vector<18x18x8xf32>
    %cst_5 = arith.constant 0.000000e+00 : f32
    %9 = vector.broadcast %cst_5 : f32 to vector<256x8xf32>
    %10 = vector.extract_strided_slice %8 {offsets = [0, 0, 0], sizes = [16, 16, 8], strides = [1, 1, 1]} : vector<18x18x8xf32> to vector<16x16x8xf32>
    %11 = vector.shape_cast %10 : vector<16x16x8xf32> to vector<256x8xf32>
    %12 = arith.truncf %11 : vector<256x8xf32> to vector<256x8xbf16>
    %c0_6 = arith.constant 0 : index
    %c0_7 = arith.constant 0 : index
    %c0_8 = arith.constant 0 : index
    %13 = vector.load %arg2[%c0_6, %c0_7, %c0_8] : memref<9x8x8xbf16, #tpu.memory_space<vmem>>, vector<1x8x8xbf16>
    %14 = vector.shape_cast %13 : vector<1x8x8xbf16> to vector<8x8xbf16>
    %cst_9 = arith.constant dense<0.000000e+00> : vector<256x8xf32>
    %15 = tpu.matmul %12, %14, %cst_9 {dimension_numbers = #tpu.dot_dimension_numbers<[1], [0], [0], [1], [0, 0, 1, 1], [], []>} : vector<256x8xbf16>, vector<8x8xbf16>, vector<256x8xf32> -> vector<256x8xf32>
    %16 = arith.addf %9, %15 : vector<256x8xf32>
    %17 = vector.extract_strided_slice %8 {offsets = [0, 1, 0], sizes = [16, 16, 8], strides = [1, 1, 1]} : vector<18x18x8xf32> to vector<16x16x8xf32>
    %18 = vector.shape_cast %17 : vector<16x16x8xf32> to vector<256x8xf32>
    %19 = arith.truncf %18 : vector<256x8xf32> to vector<256x8xbf16>
    %c1 = arith.constant 1 : index
    %c0_10 = arith.constant 0 : index
    %c0_11 = arith.constant 0 : index
    %20 = vector.load %arg2[%c1, %c0_10, %c0_11] : memref<9x8x8xbf16, #tpu.memory_space<vmem>>, vector<1x8x8xbf16>
    %21 = vector.shape_cast %20 : vector<1x8x8xbf16> to vector<8x8xbf16>
    %cst_12 = arith.constant dense<0.000000e+00> : vector<256x8xf32>
    %22 = tpu.matmul %19, %21, %cst_12 {dimension_numbers = #tpu.dot_dimension_numbers<[1], [0], [0], [1], [0, 0, 1, 1], [], []>} : vector<256x8xbf16>, vector<8x8xbf16>, vector<256x8xf32> -> vector<256x8xf32>
    %23 = arith.addf %16, %22 : vector<256x8xf32>
    %24 = vector.extract_strided_slice %8 {offsets = [0, 2, 0], sizes = [16, 16, 8], strides = [1, 1, 1]} : vector<18x18x8xf32> to vector<16x16x8xf32>
    %25 = vector.shape_cast %24 : vector<16x16x8xf32> to vector<256x8xf32>
    %26 = arith.truncf %25 : vector<256x8xf32> to vector<256x8xbf16>
    %c2 = arith.constant 2 : index
    %c0_13 = arith.constant 0 : index
    %c0_14 = arith.constant 0 : index
    %27 = vector.load %arg2[%c2, %c0_13, %c0_14] : memref<9x8x8xbf16, #tpu.memory_space<vmem>>, vector<1x8x8xbf16>
    %28 = vector.shape_cast %27 : vector<1x8x8xbf16> to vector<8x8xbf16>
    %cst_15 = arith.constant dense<0.000000e+00> : vector<256x8xf32>
    %29 = tpu.matmul %26, %28, %cst_15 {dimension_numbers = #tpu.dot_dimension_numbers<[1], [0], [0], [1], [0, 0, 1, 1], [], []>} : vector<256x8xbf16>, vector<8x8xbf16>, vector<256x8xf32> -> vector<256x8xf32>
    %30 = arith.addf %23, %29 : vector<256x8xf32>
    %31 = vector.extract_strided_slice %8 {offsets = [1, 0, 0], sizes = [16, 16, 8], strides = [1, 1, 1]} : vector<18x18x8xf32> to vector<16x16x8xf32>
    %32 = vector.shape_cast %31 : vector<16x16x8xf32> to vector<256x8xf32>
    %33 = arith.truncf %32 : vector<256x8xf32> to vector<256x8xbf16>
    %c3 = arith.constant 3 : index
    %c0_16 = arith.constant 0 : index
    %c0_17 = arith.constant 0 : index
    %34 = vector.load %arg2[%c3, %c0_16, %c0_17] : memref<9x8x8xbf16, #tpu.memory_space<vmem>>, vector<1x8x8xbf16>
    %35 = vector.shape_cast %34 : vector<1x8x8xbf16> to vector<8x8xbf16>
    %cst_18 = arith.constant dense<0.000000e+00> : vector<256x8xf32>
    %36 = tpu.matmul %33, %35, %cst_18 {dimension_numbers = #tpu.dot_dimension_numbers<[1], [0], [0], [1], [0, 0, 1, 1], [], []>} : vector<256x8xbf16>, vector<8x8xbf16>, vector<256x8xf32> -> vector<256x8xf32>
    %37 = arith.addf %30, %36 : vector<256x8xf32>
    %38 = vector.extract_strided_slice %8 {offsets = [1, 1, 0], sizes = [16, 16, 8], strides = [1, 1, 1]} : vector<18x18x8xf32> to vector<16x16x8xf32>
    %39 = vector.shape_cast %38 : vector<16x16x8xf32> to vector<256x8xf32>
    %40 = arith.truncf %39 : vector<256x8xf32> to vector<256x8xbf16>
    %c4 = arith.constant 4 : index
    %c0_19 = arith.constant 0 : index
    %c0_20 = arith.constant 0 : index
    %41 = vector.load %arg2[%c4, %c0_19, %c0_20] : memref<9x8x8xbf16, #tpu.memory_space<vmem>>, vector<1x8x8xbf16>
    %42 = vector.shape_cast %41 : vector<1x8x8xbf16> to vector<8x8xbf16>
    %cst_21 = arith.constant dense<0.000000e+00> : vector<256x8xf32>
    %43 = tpu.matmul %40, %42, %cst_21 {dimension_numbers = #tpu.dot_dimension_numbers<[1], [0], [0], [1], [0, 0, 1, 1], [], []>} : vector<256x8xbf16>, vector<8x8xbf16>, vector<256x8xf32> -> vector<256x8xf32>
    %44 = arith.addf %37, %43 : vector<256x8xf32>
    %45 = vector.extract_strided_slice %8 {offsets = [1, 2, 0], sizes = [16, 16, 8], strides = [1, 1, 1]} : vector<18x18x8xf32> to vector<16x16x8xf32>
    %46 = vector.shape_cast %45 : vector<16x16x8xf32> to vector<256x8xf32>
    %47 = arith.truncf %46 : vector<256x8xf32> to vector<256x8xbf16>
    %c5 = arith.constant 5 : index
    %c0_22 = arith.constant 0 : index
    %c0_23 = arith.constant 0 : index
    %48 = vector.load %arg2[%c5, %c0_22, %c0_23] : memref<9x8x8xbf16, #tpu.memory_space<vmem>>, vector<1x8x8xbf16>
    %49 = vector.shape_cast %48 : vector<1x8x8xbf16> to vector<8x8xbf16>
    %cst_24 = arith.constant dense<0.000000e+00> : vector<256x8xf32>
    %50 = tpu.matmul %47, %49, %cst_24 {dimension_numbers = #tpu.dot_dimension_numbers<[1], [0], [0], [1], [0, 0, 1, 1], [], []>} : vector<256x8xbf16>, vector<8x8xbf16>, vector<256x8xf32> -> vector<256x8xf32>
    %51 = arith.addf %44, %50 : vector<256x8xf32>
    %52 = vector.extract_strided_slice %8 {offsets = [2, 0, 0], sizes = [16, 16, 8], strides = [1, 1, 1]} : vector<18x18x8xf32> to vector<16x16x8xf32>
    %53 = vector.shape_cast %52 : vector<16x16x8xf32> to vector<256x8xf32>
    %54 = arith.truncf %53 : vector<256x8xf32> to vector<256x8xbf16>
    %c6 = arith.constant 6 : index
    %c0_25 = arith.constant 0 : index
    %c0_26 = arith.constant 0 : index
    %55 = vector.load %arg2[%c6, %c0_25, %c0_26] : memref<9x8x8xbf16, #tpu.memory_space<vmem>>, vector<1x8x8xbf16>
    %56 = vector.shape_cast %55 : vector<1x8x8xbf16> to vector<8x8xbf16>
    %cst_27 = arith.constant dense<0.000000e+00> : vector<256x8xf32>
    %57 = tpu.matmul %54, %56, %cst_27 {dimension_numbers = #tpu.dot_dimension_numbers<[1], [0], [0], [1], [0, 0, 1, 1], [], []>} : vector<256x8xbf16>, vector<8x8xbf16>, vector<256x8xf32> -> vector<256x8xf32>
    %58 = arith.addf %51, %57 : vector<256x8xf32>
    %59 = vector.extract_strided_slice %8 {offsets = [2, 1, 0], sizes = [16, 16, 8], strides = [1, 1, 1]} : vector<18x18x8xf32> to vector<16x16x8xf32>
    %60 = vector.shape_cast %59 : vector<16x16x8xf32> to vector<256x8xf32>
    %61 = arith.truncf %60 : vector<256x8xf32> to vector<256x8xbf16>
    %c7 = arith.constant 7 : index
    %c0_28 = arith.constant 0 : index
    %c0_29 = arith.constant 0 : index
    %62 = vector.load %arg2[%c7, %c0_28, %c0_29] : memref<9x8x8xbf16, #tpu.memory_space<vmem>>, vector<1x8x8xbf16>
    %63 = vector.shape_cast %62 : vector<1x8x8xbf16> to vector<8x8xbf16>
    %cst_30 = arith.constant dense<0.000000e+00> : vector<256x8xf32>
    %64 = tpu.matmul %61, %63, %cst_30 {dimension_numbers = #tpu.dot_dimension_numbers<[1], [0], [0], [1], [0, 0, 1, 1], [], []>} : vector<256x8xbf16>, vector<8x8xbf16>, vector<256x8xf32> -> vector<256x8xf32>
    %65 = arith.addf %58, %64 : vector<256x8xf32>
    %66 = vector.extract_strided_slice %8 {offsets = [2, 2, 0], sizes = [16, 16, 8], strides = [1, 1, 1]} : vector<18x18x8xf32> to vector<16x16x8xf32>
    %67 = vector.shape_cast %66 : vector<16x16x8xf32> to vector<256x8xf32>
    %68 = arith.truncf %67 : vector<256x8xf32> to vector<256x8xbf16>
    %c8 = arith.constant 8 : index
    %c0_31 = arith.constant 0 : index
    %c0_32 = arith.constant 0 : index
    %69 = vector.load %arg2[%c8, %c0_31, %c0_32] : memref<9x8x8xbf16, #tpu.memory_space<vmem>>, vector<1x8x8xbf16>
    %70 = vector.shape_cast %69 : vector<1x8x8xbf16> to vector<8x8xbf16>
    %cst_33 = arith.constant dense<0.000000e+00> : vector<256x8xf32>
    %71 = tpu.matmul %68, %70, %cst_33 {dimension_numbers = #tpu.dot_dimension_numbers<[1], [0], [0], [1], [0, 0, 1, 1], [], []>} : vector<256x8xbf16>, vector<8x8xbf16>, vector<256x8xf32> -> vector<256x8xf32>
    %72 = arith.addf %65, %71 : vector<256x8xf32>
    %c0_34 = arith.constant 0 : index
    %c0_35 = arith.constant 0 : index
    %73 = vector.load %arg3[%c0_34, %c0_35] : memref<1x8xf32, #tpu.memory_space<vmem>>, vector<1x8xf32>
    %74 = vector.broadcast %73 : vector<1x8xf32> to vector<256x8xf32>
    %75 = arith.mulf %72, %74 : vector<256x8xf32>
    %c0_36 = arith.constant 0 : index
    %c0_37 = arith.constant 0 : index
    %76 = vector.load %arg4[%c0_36, %c0_37] : memref<1x8xf32, #tpu.memory_space<vmem>>, vector<1x8xf32>
    %77 = vector.broadcast %76 : vector<1x8xf32> to vector<256x8xf32>
    %78 = arith.addf %75, %77 : vector<256x8xf32>
    %cst_38 = arith.constant 0.000000e+00 : f32
    %79 = vector.broadcast %cst_38 : f32 to vector<256x8xf32>
    %80 = arith.maximumf %78, %79 : vector<256x8xf32>
    %cst_39 = arith.constant 0.000000e+00 : f32
    %cst_40 = arith.constant 1.000000e+00 : f32
    %81 = vector.broadcast %cst_39 : f32 to vector<256x8xf32>
    %82 = arith.maximumf %81, %80 : vector<256x8xf32>
    %83 = vector.broadcast %cst_40 : f32 to vector<256x8xf32>
    %84 = arith.minimumf %83, %82 : vector<256x8xf32>
    %cst_41 = arith.constant 1.500000e+01 : f32
    %85 = vector.broadcast %cst_41 : f32 to vector<256x8xf32>
    %86 = arith.mulf %84, %85 : vector<256x8xf32>
    %87 = math.roundeven %86 : vector<256x8xf32>
    %88 = vector.shape_cast %87 : vector<256x8xf32> to vector<1x16x16x8xf32>
    %89 = arith.truncf %88 : vector<1x16x16x8xf32> to vector<1x16x16x8xbf16>
    %c0_42 = arith.constant 0 : index
    %c0_43 = arith.constant 0 : index
    %c0_44 = arith.constant 0 : index
    %c0_45 = arith.constant 0 : index
    %90 = vector.load %arg5[%c0_42, %c0_43, %c0_44, %c0_45] : memref<1x16x16x8xbf16, #tpu.memory_space<vmem>>, vector<1x16x16x8xbf16>
    tpu.vector_store %arg5[%c0_42, %c0_43, %c0_44, %c0_45], %89 {strides = array<i32>} : memref<1x16x16x8xbf16, #tpu.memory_space<vmem>>, vector<1x16x16x8xbf16>,
    return
  }
  func.func @transform_0(%arg0: i32) -> (i32, i32, i32, i32) {
    %c0_i32 = arith.constant 0 : i32
    %c0_i32_0 = arith.constant 0 : i32
    %c0_i32_1 = arith.constant 0 : i32
    %c0_i32_2 = arith.constant 0 : i32
    return %arg0, %c0_i32, %c0_i32_0, %c0_i32_1 : i32, i32, i32, i32
  }
  func.func @transform_1(%arg0: i32) -> (i32, i32, i32) {
    %c0_i32 = arith.constant 0 : i32
    %c0_i32_0 = arith.constant 0 : i32
    %c0_i32_1 = arith.constant 0 : i32
    %c0_i32_2 = arith.constant 0 : i32
    return %c0_i32, %c0_i32_0, %c0_i32_1 : i32, i32, i32
  }
  func.func @transform_2(%arg0: i32) -> (i32, i32) {
    %c0_i32 = arith.constant 0 : i32
    %c0_i32_0 = arith.constant 0 : i32
    %c0_i32_1 = arith.constant 0 : i32
    return %c0_i32, %c0_i32_0 : i32, i32
  }
  func.func @transform_3(%arg0: i32) -> (i32, i32) {
    %c0_i32 = arith.constant 0 : i32
    %c0_i32_0 = arith.constant 0 : i32
    %c0_i32_1 = arith.constant 0 : i32
    return %c0_i32, %c0_i32_0 : i32, i32
  }
  func.func @transform_4(%arg0: i32) -> (i32, i32, i32, i32) {
    %c0_i32 = arith.constant 0 : i32
    %c0_i32_0 = arith.constant 0 : i32
    %c0_i32_1 = arith.constant 0 : i32
    %c0_i32_2 = arith.constant 0 : i32
    return %arg0, %c0_i32, %c0_i32_0, %c0_i32_1 : i32, i32, i32, i32
  }
}

</mosaic_0001>

<bundles_post_ra>
// kernel: tpu_custom_call.1
= control target key start
LH: loop header
LB: loop body
LE: loop exit
PB: predicated region body
PF: predicated region fallthrough
CT: control target
= control target key end

     0   :  { %s4251_s15 = smov 0   ;;  %s5306_s0 = inlined_call_operand.vmem [shape: f32[2,18,18,8], index: 0, kind: input, shape index: {}]   ;;  %s5307_s1 = inlined_call_operand.vmem [shape: bf16[9,8,8], index: 1, kind: input, shape index: {}]   ;;  %s5308_s2 = inlined_call_operand.vmem [shape: f32[1,8], index: 2, kind: input, shape index: {}]   ;;  %s5309_s3 = inlined_call_operand.vmem [shape: f32[1,8], index: 3, kind: input, shape index: {}]   ;;  %s5310_s4 = inlined_call_operand.vmem [shape: bf16[2,16,16,8], index: 4, kind: output, shape index: {}]  }
   0x1 LB: > { %s3166_s16 = sadd.s32 4294967295, %s4224_s15   ;;  %p3170_p0 = scmp.ge.s32.totalorder %s4224_s15, 1  ;;  %s4224_s15 = sphi %s4251_s15, %s14_s15  }
   0x2   : > { %p162_p1 = scmp.lt.s32.totalorder %s4224_s15, 3 }
   0x4   : > { %p163_p2 = pnand %p3170_p0, %p162_p1 }
   0x6   : > { %166 = sbr.rel (%p163_p2) target bundleno = 572 (0x23c), region = 36 }
   0xd   : > { %v3174_v0 = vld [vmem:[%s5307_s1 + $0x4] sm:$0xf]  ;;  %vm714_vm0 = vcmask 1043456   ;;  %v3241_v1 = vld [vmem:[%s5307_s1 + $0x10] sm:$0xf]  ;;  %p188_p3 = scmp.lt.s32.totalorder %s3166_s16, 1 }
   0xe   : > { %4112 = vmatprep.subr.msk.bf16.mxu1 %vm714_vm0, %v3174_v0  ;;  %4116 = vmatprep.subr.msk.bf16.mxu0 %vm714_vm0, %v3241_v1  ;;  %v716_v2 = vsel %vm714_vm0, %v3174_v0, 0  ;;  %v4269_v3 = vsel %vm714_vm0, %v3241_v1, 0  ;;  %v485_v4 = vld [vmem:[%s5307_s1] sm:$0xf]  ;;  %v3258_v5 = vld [vmem:[%s5307_s1 + $0x14] sm:$0xf] }
   0xf   : > { %5345 = vst [vmem:[#allocation2_spill] sm:$0xff] %v4269_v3  ;;  %3549 = vmatpush3.bf16.msra.mxu1 %v716_v2  ;;  %3685 = vmatpush3.bf16.msra.mxu0 %v4269_v3  ;;  %s5388_s16 = smov (!%p188_p3, %s3166_s16), 1  ;;  %vm534_vm1 = vcmask 1046528   ;;  %v4292_v9 = vsel %vm714_vm0, %v485_v4, 0  ;;  %v4295_v10 = vsel %vm714_vm0, %v3258_v5, 0  ;;  %vm665_vm2 = vcmask 64512  }
  0x10   : > { %4113 = vmatprep.subr.msk.bf16.mxu1 %vm714_vm0, %v485_v4  ;;  %4118 = vmatprep.subr.msk.bf16.mxu0 %vm714_vm0, %v3258_v5  ;;  %s4122_s25 = smul.u32 432, %s5388_s16  ;;  %v4308_v35 = vld [vmem:[%s5307_s1 + $0x18] sm:$0xf]  ;;  %vm1091_vm3 = vcmask 1045504   ;;  %vm3078_vm4 = vcmask 60416   ;;  %s3362_s21 = sshll.u32 %s5388_s16, 7 }
  0x11   : > { %v4321_v47 = vsel %vm714_vm0, %v4308_v35, 0  ;;  %s5180_s16 = scalar_lea.vmem %s5310_s4, %s3362_s21 }
  0x12   : > { %s4286_s28 = scalar_lea.vmem %s5306_s0, %s4122_s25 }
  0x13   : > { %v199_v6 = vld [vmem:[%s4286_s28] sm:$0xff]  ;;  %v200_v7 = vld [vmem:[%s4286_s28 + $0x8] sm:$0xff]  ;;  %v201_v8 = vld [vmem:[%s4286_s28 + $0x10] sm:$0x3] }
  0x14   : > { %v253_v11 = vmax.f32 %v199_v6, 0.0  ;;  %v254_v12 = vmax.f32 %v200_v7, 0.0  ;;  %v255_v13 = vmax.f32 %v201_v8, 0.0  ;;  %v202_v14 = vld [vmem:[%s4286_s28 + $0x18] sm:$0xff]  ;;  %v203_v15 = vld [vmem:[%s4286_s28 + $0x20] sm:$0xff]  ;;  %v205_v16 = vld [vmem:[%s4286_s28 + $0x30] sm:$0xff] }
  0x15   : > { %v204_v17 = vld [vmem:[%s4286_s28 + $0x28] sm:$0x3]  ;;  %v256_v18 = vmax.f32 %v202_v14, 0.0  ;;  %v257_v19 = vmax.f32 %v203_v15, 0.0  ;;  %v206_v20 = vld [vmem:[%s4286_s28 + $0x38] sm:$0xff]  ;;  %v259_v21 = vmax.f32 %v205_v16, 0.0 }
  0x16   : > { %v307_v22 = vmin.f32 %v253_v11, 1.0  ;;  %v308_v23 = vmin.f32 %v254_v12, 1.0  ;;  %v309_v24 = vmin.f32 %v255_v13, 1.0  ;;  %v258_v25 = vmax.f32 %v204_v17, 0.0  ;;  %v207_v26 = vld [vmem:[%s4286_s28 + $0x40] sm:$0x3] }
  0x17   : > { %v310_v27 = vmin.f32 %v256_v18, 1.0  ;;  %v311_v28 = vmin.f32 %v257_v19, 1.0  ;;  %v260_v29 = vmax.f32 %v206_v20, 0.0  ;;  %v261_v30 = vmax.f32 %v207_v26, 0.0  ;;  %v208_v56 = vld [vmem:[%s4286_s28 + $0x48] sm:$0xff]  ;;  %v209_v61 = vld [vmem:[%s4286_s28 + $0x50] sm:$0xff] }
  0x18   : > { %v361_v31 = vmul.f32 15.0, %v307_v22  ;;  %v362_v32 = vmul.f32 15.0, %v308_v23  ;;  %v4303_v33 = vmul.f32 15.0, %v309_v24  ;;  %v312_v34 = vmin.f32 %v258_v25, 1.0  ;;  %v210_v62 = vld [vmem:[%s4286_s28 + $0x58] sm:$0x3] }
  0x19   : > { %v364_v36 = vmul.f32 15.0, %v310_v27  ;;  %v365_v37 = vmul.f32 15.0, %v311_v28  ;;  %v313_v38 = vmin.f32 %v259_v21, 1.0  ;;  %v314_v39 = vmin.f32 %v260_v29, 1.0  ;;  %v211_v63 = vld [vmem:[%s4286_s28 + $0x60] sm:$0xff]  ;;  %v212_v20 = vld [vmem:[%s4286_s28 + $0x68] sm:$0xff] }
  0x1a   : > { %v4310_v40 = vround.rtne.f32 %v361_v31  ;;  %v4312_v41 = vround.rtne.f32 %v362_v32  ;;  %v5311_v42 = vround.rtne.f32 %v4303_v33  ;;  %v366_v43 = vmul.f32 15.0, %v312_v34  ;;  %v4351_v15 = vld [vmem:[%s5307_s1 + $0x8] sm:$0xf]  ;;  %v213_v21 = vld [vmem:[%s4286_s28 + $0x70] sm:$0x3]  ;;  %v214_v26 = vld [vmem:[%s4286_s28 + $0x78] sm:$0xff] }
  0x1b   : > { %v4315_v44 = vround.rtne.f32 %v364_v36  ;;  %v4317_v45 = vround.rtne.f32 %v365_v37  ;;  %v315_v46 = vmin.f32 %v261_v30, 1.0  ;;  %v367_v51 = vmul.f32 15.0, %v313_v38  ;;  %v215_v31 = vld [vmem:[%s4286_s28 + $0x80] sm:$0xff]  ;;  %v216_v38 = vld [vmem:[%s4286_s28 + $0x88] sm:$0x3] }
  0x1c   : > { %v535_v48 = vrot.slane %v4310_v40, 1  ;;  %v536_v49 = vrot.slane %v4312_v41, 1  ;;  %v538_v50 = vrot.slane %v5311_v42, 1  ;;  %v4128_v52 = vround.rtne.f32 %v366_v43 }
  0x1d   : > { %v4329_v53 = vpack.c.bf16 %v4317_v45, %v4315_v44  ;;  %v540_v54 = vrot.slane %v4315_v44, 1  ;;  %v541_v55 = vrot.slane %v4317_v45, 1  ;;  %v368_v59 = vmul.f32 15.0, %v314_v39 }
  0x1e   : > { %v537_v57 = vsel %vm534_vm1, %v535_v48, %v536_v49  ;;  %v539_v58 = vsel %vm534_vm1, %v536_v49, %v538_v50  ;;  %v369_v60 = vmul.f32 15.0, %v315_v46  ;;  %v543_v2 = vrot.slane %v4128_v52, 1 }
  0x1f   : > { %v647_v0 = vpack.c.bf16 %v539_v58, %v537_v57  ;;  %v542_v1 = vsel %vm534_vm1, %v540_v54, %v541_v55  ;;  %v4340_v4 = vrot.slane %v4128_v52, 2  ;;  %v4342_v5 = vround.rtne.f32 %v367_v51 }
  0x20   : > { %v4344_v6 = vround.rtne.f32 %v368_v59  ;;  %v4131_v7 = vround.rtne.f32 %v369_v60  ;;  %v262_v8 = vmax.f32 %v208_v56, 0.0  ;;  %v544_v11 = vsel %vm534_vm1, %v541_v55, %v543_v2 }
  0x21   : > { %3550 = vmatprep.mubr.msk.bf16.mxu1 %vm665_vm2, %v647_v0  ;;  %v263_v12 = vmax.f32 %v209_v61, 0.0  ;;  %v264_v13 = vmax.f32 %v210_v62, 0.0  ;;  %v265_v14 = vmax.f32 %v211_v63, 0.0  ;;  %v648_v16 = vpack.c.bf16 %v544_v11, %v542_v1  ;;  %v218_v11 = vld [vmem:[%s4286_s28 + $0x98] sm:$0xff] }
  0x22   : > { %v545_v17 = vrot.slane %v4342_v5, 1  ;;  %v546_v18 = vrot.slane %v4344_v6, 1  ;;  %v548_v19 = vrot.slane %v4131_v7, 1  ;;  %v1102_v22 = vrot.slane %v4342_v5, 2 }
  0x23   : > { %v1103_v23 = vrot.slane %v4344_v6, 2  ;;  %v4359_v24 = vrot.slane %v4131_v7, 2  ;;  %v316_v25 = vmin.f32 %v262_v8, 1.0  ;;  %3686 = vmatprep.mubr.msk.bf16.mxu0 %vm665_vm2, %v648_v16  ;;  %3551 = vmatmul.mubr.msk.bf16.vlgmr.msra.gmra.mrb[0].mxu1 %vm665_vm2, %v648_v16  ;;  %v317_v29 = vmin.f32 %v263_v12, 1.0  ;;  %v217_v8 = vld [vmem:[%s4286_s28 + $0x90] sm:$0xff] }
  0x24   : > { %v547_v27 = vsel %vm534_vm1, %v545_v17, %v546_v18  ;;  %v549_v28 = vsel %vm534_vm1, %v546_v18, %v548_v19  ;;  %v318_v30 = vmin.f32 %v264_v13, 1.0  ;;  %3583 = vmatpush3.bf16.msra.mxu1 %v4292_v9  ;;  %v266_v36 = vmax.f32 %v212_v20, 0.0  ;;  %v219_v16 = vld [vmem:[%s4286_s28 + $0xa0] sm:$0x3] }
  0x25   : > { %v4368_v32 = vpack.c.bf16 %v549_v28, %v547_v27  ;;  %v370_v34 = vmul.f32 15.0, %v316_v25  ;;  %v267_v37 = vmax.f32 %v213_v21, 0.0  ;;  %v371_v39 = vmul.f32 15.0, %v317_v29  ;;  %4114 = vmatprep.subr.msk.bf16.mxu1 %vm714_vm0, %v4351_v15  ;;  %v220_v28 = vld [vmem:[%s4286_s28 + $0xa8] sm:$0xff] }
  0x26   : > { %v4371_v43 = vmul.f32 15.0, %v318_v30  ;;  %v319_v46 = vmin.f32 %v265_v14, 1.0  ;;  %v268_v48 = vmax.f32 %v214_v26, 0.0  ;;  %v320_v49 = vmin.f32 %v266_v36, 1.0  ;;  %v221_v36 = vld [vmem:[%s4286_s28 + $0xb0] sm:$0xff] }
  0x27   : > { %5346 = vst [vmem:[#allocation3_spill] sm:$0xff] %v4368_v32  ;;  %3687 = vmatmul.mubr.msk.bf16.vlgmr.msra.gmra.mrb[0].mxu0 %vm665_vm2, %v4368_v32  ;;  %3554 = vmatprep.mubr.msk.bf16.mxu1 %vm665_vm2, %v4368_v32  ;;  %v4379_v9 = vround.rtne.f32 %v370_v34  ;;  %v321_v50 = vmin.f32 %v267_v37, 1.0  ;;  %v269_v51 = vmax.f32 %v215_v31, 0.0  ;;  %v4382_v52 = vround.rtne.f32 %v371_v39  ;;  %v222_v37 = vld [vmem:[%s4286_s28 + $0xb8] sm:$0x3] }
  0x28   : > { %3719 = vmatpush3.bf16.msra.mxu0 %v4295_v10  ;;  %v4134_v54 = vround.rtne.f32 %v4371_v43  ;;  %v373_v55 = vmul.f32 15.0, %v319_v46  ;;  %v270_v56 = vmax.f32 %v216_v38, 0.0  ;;  %v374_v58 = vmul.f32 15.0, %v320_v49 }
  0x29   : > { %v550_v57 = vrot.slane %v4379_v9, 1  ;;  %v4386_v59 = vmul.f32 15.0, %v321_v50  ;;  %v322_v60 = vmin.f32 %v268_v48, 1.0  ;;  %4119 = vmatprep.subr.msk.bf16.mxu0 %vm714_vm0, %v4308_v35  ;;  %v551_v10 = vrot.slane %v4382_v52, 1 }
  0x2a   : > { %v553_v61 = vrot.slane %v4134_v54, 1  ;;  %v4393_v62 = vround.rtne.f32 %v373_v55  ;;  %v323_v63 = vmin.f32 %v269_v51, 1.0  ;;  %v4395_v0 = vround.rtne.f32 %v374_v58 }
  0x2b   : > { %v4137_v1 = vround.rtne.f32 %v4386_v59  ;;  %v324_v2 = vmin.f32 %v270_v56, 1.0  ;;  %v376_v7 = vmul.f32 15.0, %v322_v60  ;;  %v552_v12 = vsel %vm534_vm1, %v550_v57, %v551_v10 }
  0x2c   : > { %v554_v35 = vsel %vm534_vm1, %v551_v10, %v553_v61  ;;  %v555_v13 = vrot.slane %v4393_v62, 1  ;;  %v377_v14 = vmul.f32 15.0, %v323_v63  ;;  %v556_v18 = vrot.slane %v4395_v0, 1  ;;  %v223_v10 = vld [vmem:[%s4286_s28 + $0xc0] sm:$0xff] }
  0x2d   : > { %v4404_v17 = vpack.c.bf16 %v554_v35, %v552_v12  ;;  %v558_v19 = vrot.slane %v4137_v1, 1  ;;  %v4409_v20 = vmul.f32 15.0, %v324_v2  ;;  %v4411_v21 = vround.rtne.f32 %v376_v7 }
  0x2e   : > { %v4413_v25 = vround.rtne.f32 %v377_v14  ;;  %v271_v26 = vmax.f32 %v217_v8, 0.0  ;;  %v272_v27 = vmax.f32 %v218_v11, 0.0  ;;  %v557_v29 = vsel %vm534_vm1, %v555_v13, %v556_v18  ;;  %v224_v8 = vld [vmem:[%s4286_s28 + $0xc8] sm:$0xff]  ;;  %v225_v14 = vld [vmem:[%s4286_s28 + $0xd0] sm:$0x3] }
  0x2f   : > { %5347 = vst [vmem:[#allocation4_spill] sm:$0xff] %v4404_v17  ;;  %3690 = vmatprep.mubr.msk.bf16.mxu0 %vm665_vm2, %v4404_v17  ;;  %3555 = vmatmul.mubr.msk.bf16.gmra.mrb[4].mxu1 %vm665_vm2, %v4404_v17  ;;  %v559_v30 = vsel %vm534_vm1, %v556_v18, %v558_v19  ;;  %v5317_v31 = vround.rtne.f32 %v4409_v20  ;;  %v273_v34 = vmax.f32 %v219_v16, 0.0  ;;  %v560_v39 = vrot.slane %v4411_v21, 1 }
  0x30   : > { %v4425_v38 = vpack.c.bf16 %v559_v30, %v557_v29  ;;  %v561_v46 = vrot.slane %v4413_v25, 1  ;;  %v325_v48 = vmin.f32 %v271_v26, 1.0  ;;  %v326_v50 = vmin.f32 %v272_v27, 1.0 }
  0x31   : > { %v563_v49 = vrot.slane %v5317_v31, 1  ;;  %v327_v51 = vmin.f32 %v273_v34, 1.0  ;;  %v274_v55 = vmax.f32 %v220_v28, 0.0  ;;  %v275_v58 = vmax.f32 %v221_v36, 0.0 }
  0x32   : > { %5348 = vst [vmem:[#allocation5_spill] sm:$0xff] %v4425_v38  ;;  %3691 = vmatmul.mubr.msk.bf16.gmra.mrb[4].mxu0 %vm665_vm2, %v4425_v38  ;;  %3558 = vmatprep.mubr.msk.bf16.mxu1 %vm665_vm2, %v4425_v38  ;;  %v562_v56 = vsel %vm534_vm1, %v560_v39, %v561_v46  ;;  %v379_v57 = vmul.f32 15.0, %v325_v48  ;;  %v276_v60 = vmax.f32 %v222_v37, 0.0  ;;  %v380_v63 = vmul.f32 15.0, %v326_v50 }
  0x33   : > { %v564_v61 = vsel %vm534_vm1, %v561_v46, %v563_v49  ;;  %v4438_v2 = vmul.f32 15.0, %v327_v51  ;;  %v328_v7 = vmin.f32 %v274_v55, 1.0  ;;  %v329_v35 = vmin.f32 %v275_v58, 1.0  ;;  %v226_v58 = vld [vmem:[%s4286_s28 + $0xd8] sm:$0xff] }
  0x34   : > { %v4441_v11 = vpack.c.bf16 %v564_v61, %v562_v56  ;;  %v4443_v12 = vround.rtne.f32 %v379_v57  ;;  %v330_v13 = vmin.f32 %v276_v60, 1.0  ;;  %v4446_v16 = vround.rtne.f32 %v380_v63 }
  0x35   : > { %v5315_v18 = vround.rtne.f32 %v4438_v2  ;;  %v382_v19 = vmul.f32 15.0, %v328_v7  ;;  %v277_v26 = vmax.f32 %v223_v10, 0.0  ;;  %v383_v28 = vmul.f32 15.0, %v329_v35  ;;  %v227_v7 = vld [vmem:[%s4286_s28 + $0xe0] sm:$0xff] }
  0x36   : > { %5349 = vst [vmem:[#allocation6_spill] sm:$0xff] %v4441_v11  ;;  %3694 = vmatprep.mubr.msk.bf16.mxu0 %vm665_vm2, %v4441_v11  ;;  %v565_v27 = vrot.slane %v4443_v12, 1  ;;  %v4452_v29 = vmul.f32 15.0, %v330_v13  ;;  %v278_v30 = vmax.f32 %v224_v8, 0.0  ;;  %v566_v34 = vrot.slane %v4446_v16, 1 }
  0x37   : > { %3559 = vmatmul.mubr.msk.bf16.gmra.mrb[8].mxu1 %vm665_vm2, %v4441_v11  ;;  %v568_v36 = vrot.slane %v5315_v18, 1  ;;  %v4459_v37 = vround.rtne.f32 %v382_v19  ;;  %v279_v39 = vmax.f32 %v225_v14, 0.0  ;;  %v4461_v46 = vround.rtne.f32 %v383_v28  ;;  %v228_v19 = vld [vmem:[%s4286_s28 + $0xe8] sm:$0x3] }
  0x38   : > { %v5313_v48 = vround.rtne.f32 %v4452_v29  ;;  %v331_v49 = vmin.f32 %v277_v26, 1.0  ;;  %v332_v50 = vmin.f32 %v278_v30, 1.0  ;;  %v567_v51 = vsel %vm534_vm1, %v565_v27, %v566_v34 }
  0x39   : > { %v569_v55 = vsel %vm534_vm1, %v566_v34, %v568_v36  ;;  %v570_v56 = vrot.slane %v4459_v37, 1  ;;  %v333_v57 = vmin.f32 %v279_v39, 1.0  ;;  %v571_v10 = vrot.slane %v4461_v46, 1 }
  0x3a   : > { %v4468_v60 = vpack.c.bf16 %v569_v55, %v567_v51  ;;  %v573_v61 = vrot.slane %v5313_v48, 1  ;;  %v385_v63 = vmul.f32 15.0, %v331_v49  ;;  %v386_v8 = vmul.f32 15.0, %v332_v50 }
  0x3b   : > { %v4474_v35 = vmul.f32 15.0, %v333_v57  ;;  %v1097_v13 = vrot.slane %v4315_v44, 2  ;;  %v1098_v14 = vrot.slane %v4317_v45, 2  ;;  %v572_v26 = vsel %vm534_vm1, %v570_v56, %v571_v10 }
  0x3c   : > { %5350 = vst [vmem:[#allocation7_spill] sm:$0xff] %v4468_v60  ;;  %3695 = vmatmul.mubr.msk.bf16.gmra.mrb[8].mxu0 %vm665_vm2, %v4468_v60  ;;  %3562 = vmatprep.mubr.msk.bf16.mxu1 %vm665_vm2, %v4468_v60  ;;  %v574_v27 = vsel %vm534_vm1, %v571_v10, %v573_v61  ;;  %v4485_v28 = vround.rtne.f32 %v385_v63  ;;  %v280_v30 = vmax.f32 %v226_v58, 0.0  ;;  %v4489_v44 = vround.rtne.f32 %v386_v8  ;;  %v229_v10 = vld [vmem:[%s4286_s28 + $0xf0] sm:$0xff]  ;;  %v230_v8 = vld [vmem:[%s4286_s28 + $0xf8] sm:$0xff] }
  0x3d   : > { %v4487_v34 = vpack.c.bf16 %v574_v27, %v572_v26  ;;  %v5312_v45 = vround.rtne.f32 %v4474_v35  ;;  %v1099_v36 = vsel %vm1091_vm3, %v1097_v13, %v1098_v14  ;;  %v1101_v49 = vsel %vm1091_vm3, %v1098_v14, %v4340_v4  ;;  %v231_v13 = vld [vmem:[%s4286_s28 + $0x100] sm:$0x3] }
  0x3e   : > { %v575_v39 = vrot.slane %v4485_v28, 1  ;;  %v281_v50 = vmax.f32 %v227_v7, 0.0  ;;  %v282_v51 = vmax.f32 %v228_v19, 0.0  ;;  %v576_v55 = vrot.slane %v4489_v44, 1 }
  0x3f   : > { %5351 = vst [vmem:[#allocation8_spill] sm:$0xff] %v4487_v34  ;;  %3698 = vmatprep.mubr.msk.bf16.mxu0 %vm665_vm2, %v4487_v34  ;;  %3563 = vmatmul.mubr.msk.bf16.gmra.mrb[12].mxu1 %vm665_vm2, %v4487_v34  ;;  %v578_v56 = vrot.slane %v5312_v45, 1  ;;  %v4503_v57 = vpack.c.bf16 %v1101_v49, %v1099_v36  ;;  %v334_v58 = vmin.f32 %v280_v30, 1.0  ;;  %v1104_v4 = vsel %vm1091_vm3, %v1102_v22, %v1103_v23 }
  0x40   : > { %v335_v61 = vmin.f32 %v281_v50, 1.0  ;;  %v336_v63 = vmin.f32 %v282_v51, 1.0  ;;  %v1106_v7 = vsel %vm1091_vm3, %v1103_v23, %v4359_v24  ;;  %v577_v14 = vsel %vm534_vm1, %v575_v39, %v576_v55 }
  0x41   : > { %v579_v19 = vsel %vm534_vm1, %v576_v55, %v578_v56  ;;  %v388_v26 = vmul.f32 15.0, %v334_v58  ;;  %v4519_v27 = vpack.c.bf16 %v1106_v7, %v1104_v4  ;;  %v283_v22 = vmax.f32 %v229_v10, 0.0  ;;  %v232_v10 = vld [vmem:[%s4286_s28 + $0x108] sm:$0xff] }
  0x42   : > { %v4521_v30 = vpack.c.bf16 %v579_v19, %v577_v14  ;;  %v389_v36 = vmul.f32 15.0, %v335_v61  ;;  %v4523_v49 = vmul.f32 15.0, %v336_v63  ;;  %v284_v51 = vmax.f32 %v230_v8, 0.0 }
  0x43   : > { %v4525_v50 = vround.rtne.f32 %v388_v26  ;;  %v285_v23 = vmax.f32 %v231_v13, 0.0  ;;  %v1107_v24 = vrot.slane %v4379_v9, 2  ;;  %v337_v56 = vmin.f32 %v283_v22, 1.0  ;;  %v233_v26 = vld [vmem:[%s4286_s28 + $0x110] sm:$0xff] }
  0x44   : > { %5352 = vst [vmem:[#allocation9_spill] sm:$0xff] %v4521_v30  ;;  %3699 = vmatmul.mubr.msk.bf16.gmra.mrb[12].mxu0 %vm665_vm2, %v4521_v30  ;;  %3566 = vmatprep.mubr.msk.bf16.mxu1 %vm665_vm2, %v4521_v30  ;;  %v4532_v39 = vround.rtne.f32 %v389_v36  ;;  %v5314_v55 = vround.rtne.f32 %v4523_v49  ;;  %v1108_v58 = vrot.slane %v4382_v52, 2  ;;  %v338_v63 = vmin.f32 %v284_v51, 1.0  ;;  %v234_v51 = vld [vmem:[%s4286_s28 + $0x118] sm:$0x3] }
  0x45   : > { %3720 = vmatprep.mubr.msk.bf16.mxu0 %vm665_vm2, %v4503_v57  ;;  %v580_v61 = vrot.slane %v4525_v50, 1  ;;  %v339_v4 = vmin.f32 %v285_v23, 1.0  ;;  %v1110_v7 = vrot.slane %v4134_v54, 2  ;;  %v391_v14 = vmul.f32 15.0, %v337_v56 }
  0x46   : > { %v581_v8 = vrot.slane %v4532_v39, 1  ;;  %v583_v13 = vrot.slane %v5314_v55, 1  ;;  %v1109_v19 = vsel %vm1091_vm3, %v1107_v24, %v1108_v58  ;;  %v392_v36 = vmul.f32 15.0, %v338_v63  ;;  %v235_v55 = vld [vmem:[%s4286_s28 + $0x120] sm:$0xff] }
  0x47   : > { %v4547_v22 = vmul.f32 15.0, %v339_v4  ;;  %v1111_v42 = vsel %vm1091_vm3, %v1108_v58, %v1110_v7  ;;  %v286_v23 = vmax.f32 %v232_v10, 0.0  ;;  %v4553_v45 = vround.rtne.f32 %v391_v14 }
  0x48   : > { %v582_v43 = vsel %vm534_vm1, %v580_v61, %v581_v8  ;;  %v584_v54 = vsel %vm534_vm1, %v581_v8, %v583_v13  ;;  %v4555_v48 = vpack.c.bf16 %v1111_v42, %v1109_v19  ;;  %v4559_v24 = vround.rtne.f32 %v392_v36  ;;  %v4568_v42 = vld [vmem:[%s5307_s1 + $0x1c] sm:$0xf] }
  0x49   : > { %v4557_v56 = vpack.c.bf16 %v584_v54, %v582_v43  ;;  %v5316_v63 = vround.rtne.f32 %v4547_v22  ;;  %v287_v4 = vmax.f32 %v233_v26, 0.0  ;;  %v585_v58 = vrot.slane %v4553_v45, 1  ;;  %v236_v26 = vld [vmem:[%s4286_s28 + $0x128] sm:$0xff]  ;;  %v237_v43 = vld [vmem:[%s4286_s28 + $0x130] sm:$0x3] }
  0x4a   : > { %v288_v10 = vmax.f32 %v234_v51, 0.0  ;;  %v340_v61 = vmin.f32 %v286_v23, 1.0  ;;  %v1112_v7 = vrot.slane %v4393_v62, 2  ;;  %v586_v8 = vrot.slane %v4559_v24, 1 }
  0x4b   : > { %5353 = vst [vmem:[#allocation10_spill] sm:$0xff] %v4557_v56  ;;  %3567 = vmatmul.mubr.msk.bf16.gmra.mrb[16].mxu1 %vm665_vm2, %v4557_v56  ;;  %v588_v13 = vrot.slane %v5316_v63, 1  ;;  %v341_v14 = vmin.f32 %v287_v4, 1.0  ;;  %v1113_v19 = vrot.slane %v4395_v0, 2  ;;  %v1115_v23 = vrot.slane %v4137_v1, 2 }
  0x4c   : > { %3721 = vmatmul.mubr.msk.bf16.vlgmr.msra.gmra.mrb[0].mxu0 %vm665_vm2, %v4519_v27  ;;  %v342_v36 = vmin.f32 %v288_v10, 1.0  ;;  %v394_v51 = vmul.f32 15.0, %v340_v61  ;;  %v289_v54 = vmax.f32 %v235_v55, 0.0  ;;  %v587_v18 = vsel %vm534_vm1, %v585_v58, %v586_v8 }
  0x4d   : > { %3753 = vmatpush3.bf16.msra.mxu0 %v4321_v47  ;;  %v589_v4 = vsel %vm534_vm1, %v586_v8, %v588_v13  ;;  %3724 = vmatprep.mubr.msk.bf16.mxu0 %vm665_vm2, %v4555_v48  ;;  %v395_v63 = vmul.f32 15.0, %v341_v14  ;;  %v1114_v31 = vsel %vm1091_vm3, %v1112_v7, %v1113_v19  ;;  %v1116_v1 = vsel %vm1091_vm3, %v1113_v19, %v1115_v23  ;;  %v238_v13 = vld [vmem:[%s4286_s28 + $0x138] sm:$0xff] }
  0x4e   : > { %v4588_v10 = vpack.c.bf16 %v589_v4, %v587_v18  ;;  %v4590_v61 = vmul.f32 15.0, %v342_v36  ;;  %v4592_v59 = vround.rtne.f32 %v394_v51  ;;  %4120 = vmatprep.subr.msk.bf16.mxu0 %vm714_vm0, %v4568_v42  ;;  %v4599_v55 = vpack.c.bf16 %v1116_v1, %v1114_v31 }
  0x4f   : > { %v4597_v47 = vround.rtne.f32 %v395_v63  ;;  %v290_v58 = vmax.f32 %v236_v26, 0.0  ;;  %v291_v8 = vmax.f32 %v237_v43, 0.0  ;;  %v343_v14 = vmin.f32 %v289_v54, 1.0  ;;  %v239_v26 = vld [vmem:[%s4286_s28 + $0x140] sm:$0xff] }
  0x50   : > { %5354 = vst [vmem:[#allocation11_spill] sm:$0xff] %v4588_v10  ;;  %3570 = vmatprep.mubr.msk.bf16.mxu1 %vm665_vm2, %v4588_v10  ;;  %v5324_v18 = vround.rtne.f32 %v4590_v61  ;;  %v590_v7 = vrot.slane %v4592_v59, 1  ;;  %v1117_v19 = vrot.slane %v4411_v21, 2  ;;  %v1118_v31 = vrot.slane %v4413_v25, 2 }
  0x51   : > { %v591_v36 = vrot.slane %v4597_v47, 1  ;;  %v344_v63 = vmin.f32 %v290_v58, 1.0  ;;  %v345_v51 = vmin.f32 %v291_v8, 1.0  ;;  %v397_v43 = vmul.f32 15.0, %v343_v14  ;;  %v240_v8 = vld [vmem:[%s4286_s28 + $0x148] sm:$0x3] }
  0x52   : > { %v593_v23 = vrot.slane %v5324_v18, 1  ;;  %v5355_v4 = vround.rtne.f32 %v4409_v20  ;;  %v292_v3 = vmax.f32 %v238_v13, 0.0  ;;  %v1119_v58 = vsel %vm1091_vm3, %v1117_v19, %v1118_v31 }
  0x53   : > { %v592_v10 = vsel %vm534_vm1, %v590_v7, %v591_v36  ;;  %v398_v54 = vmul.f32 15.0, %v344_v63  ;;  %v4615_v56 = vmul.f32 15.0, %v345_v51  ;;  %v4622_v18 = vround.rtne.f32 %v397_v43  ;;  %v241_v43 = vld [vmem:[%s4286_s28 + $0x150] sm:$0xff] }
  0x54   : > { %v1120_v1 = vrot.slane %v5355_v4, 2  ;;  %v594_v30 = vsel %vm534_vm1, %v591_v36, %v593_v23  ;;  %3725 = vmatmul.mubr.msk.bf16.gmra.mrb[4].mxu0 %vm665_vm2, %v4599_v55  ;;  %v293_v14 = vmax.f32 %v239_v26, 0.0  ;;  %v294_v36 = vmax.f32 %v240_v8, 0.0 }
  0x55   : > { %v4625_v13 = vpack.c.bf16 %v594_v30, %v592_v10  ;;  %v4627_v7 = vround.rtne.f32 %v398_v54  ;;  %v5328_v63 = vround.rtne.f32 %v4615_v56  ;;  %v595_v19 = vrot.slane %v4622_v18, 1 }
  0x56   : > { %v1121_v20 = vsel %vm1091_vm3, %v1118_v31, %v1120_v1  ;;  %v346_v23 = vmin.f32 %v292_v3, 1.0  ;;  %v347_v4 = vmin.f32 %v293_v14, 1.0  ;;  %v1122_v10 = vrot.slane %v4443_v12, 2  ;;  %v242_v1 = vld [vmem:[%s4286_s28 + $0x158] sm:$0xff]  ;;  %v243_v14 = vld [vmem:[%s4286_s28 + $0x160] sm:$0x3] }
  0x57   : > { %5356 = vst [vmem:[#allocation12_spill] sm:$0xff] %v4625_v13  ;;  %v4630_v51 = vpack.c.bf16 %v1121_v20, %v1119_v58  ;;  %3571 = vmatmul.mubr.msk.bf16.gmra.mrb[20].mxu1 %vm665_vm2, %v4625_v13  ;;  %v596_v31 = vrot.slane %v4627_v7, 1  ;;  %v598_v30 = vrot.slane %v5328_v63, 1  ;;  %v1123_v26 = vrot.slane %v4446_v16, 2 }
  0x58   : > { %v348_v54 = vmin.f32 %v294_v36, 1.0  ;;  %v400_v3 = vmul.f32 15.0, %v346_v23  ;;  %v401_v58 = vmul.f32 15.0, %v347_v4  ;;  %v5358_v8 = vround.rtne.f32 %v4438_v2 }
  0x59   : > { %5357 = vst [vmem:[#allocation13_spill] sm:$0xff] %v4630_v51  ;;  %3728 = vmatprep.mubr.msk.bf16.mxu0 %vm665_vm2, %v4630_v51  ;;  %v597_v13 = vsel %vm534_vm1, %v595_v19, %v596_v31  ;;  %v599_v34 = vsel %vm534_vm1, %v596_v31, %v598_v30  ;;  %v1124_v63 = vsel %vm1091_vm3, %v1122_v10, %v1123_v26  ;;  %v295_v60 = vmax.f32 %v241_v43, 0.0  ;;  %v244_v30 = vld [vmem:[%s4286_s28 + $0x168] sm:$0xff] }
  0x5a   : > { %v1125_v20 = vrot.slane %v5358_v8, 2  ;;  %v4650_v11 = vpack.c.bf16 %v599_v34, %v597_v13  ;;  %v4652_v38 = vmul.f32 15.0, %v348_v54  ;;  %v4654_v17 = vround.rtne.f32 %v400_v3 }
  0x5b   : > { %v4656_v36 = vround.rtne.f32 %v401_v58  ;;  %v296_v23 = vmax.f32 %v242_v1, 0.0  ;;  %v297_v4 = vmax.f32 %v243_v14, 0.0  ;;  %v349_v19 = vmin.f32 %v295_v60, 1.0  ;;  %v245_v1 = vld [vmem:[%s4286_s28 + $0x170] sm:$0xff] }
  0x5c   : > { %5359 = vst [vmem:[#allocation14_spill] sm:$0xff] %v4650_v11  ;;  %v1126_v2 = vsel %vm1091_vm3, %v1123_v26, %v1125_v20  ;;  %3574 = vmatprep.mubr.msk.bf16.mxu1 %vm665_vm2, %v4650_v11  ;;  %v5335_v31 = vround.rtne.f32 %v4652_v38  ;;  %v600_v34 = vrot.slane %v4654_v17, 1  ;;  %v1127_v26 = vrot.slane %v4459_v37, 2 }
  0x5d   : > { %v601_v13 = vrot.slane %v4656_v36, 1  ;;  %v4664_v43 = vpack.c.bf16 %v1126_v2, %v1124_v63  ;;  %v350_v10 = vmin.f32 %v296_v23, 1.0  ;;  %v351_v54 = vmin.f32 %v297_v4, 1.0  ;;  %v246_v4 = vld [vmem:[%s4286_s28 + $0x178] sm:$0x3] }
  0x5e   : > { %v403_v3 = vmul.f32 15.0, %v349_v19  ;;  %v603_v58 = vrot.slane %v5335_v31, 1  ;;  %v1128_v8 = vrot.slane %v4461_v46, 2  ;;  %v5361_v63 = vround.rtne.f32 %v4452_v29 }
  0x5f   : > { %5360 = vst [vmem:[#allocation15_spill] sm:$0xff] %v4664_v43  ;;  %v602_v60 = vsel %vm534_vm1, %v600_v34, %v601_v13  ;;  %3729 = vmatmul.mubr.msk.bf16.gmra.mrb[8].mxu0 %vm665_vm2, %v4664_v43  ;;  %v404_v14 = vmul.f32 15.0, %v350_v10  ;;  %v4677_v2 = vmul.f32 15.0, %v351_v54  ;;  %v298_v19 = vmax.f32 %v244_v30, 0.0 }
  0x60   : > { %v1130_v20 = vrot.slane %v5361_v63, 2  ;;  %v4679_v23 = vround.rtne.f32 %v403_v3  ;;  %v604_v34 = vsel %vm534_vm1, %v601_v13, %v603_v58  ;;  %v1129_v11 = vsel %vm1091_vm3, %v1127_v26, %v1128_v8 }
  0x61   : > { %v299_v32 = vmax.f32 %v245_v1, 0.0  ;;  %v4685_v43 = vpack.c.bf16 %v604_v34, %v602_v60  ;;  %v4687_v51 = vround.rtne.f32 %v404_v14  ;;  %v5341_v29 = vround.rtne.f32 %v4677_v2 }
  0x62   : > { %v1131_v31 = vsel %vm1091_vm3, %v1128_v8, %v1130_v20  ;;  %v605_v10 = vrot.slane %v4679_v23, 1  ;;  %v300_v3 = vmax.f32 %v246_v4, 0.0  ;;  %v352_v63 = vmin.f32 %v298_v19, 1.0 }
  0x63   : > { %5362 = vst [vmem:[#allocation16_spill] sm:$0xff] %v4685_v43  ;;  %v4691_v54 = vpack.c.bf16 %v1131_v31, %v1129_v11  ;;  %v353_v30 = vmin.f32 %v299_v32, 1.0  ;;  %3575 = vmatmul.mubr.msk.bf16.gmra.mrb[24].mxu1 %vm665_vm2, %v4685_v43  ;;  %v606_v13 = vrot.slane %v4687_v51, 1  ;;  %v608_v26 = vrot.slane %v5341_v29, 1 }
  0x64   : > { %v1132_v1 = vrot.slane %v4485_v28, 2  ;;  %v1133_v60 = vrot.slane %v4489_v44, 2  ;;  %v354_v11 = vmin.f32 %v300_v3, 1.0  ;;  %v406_v31 = vmul.f32 15.0, %v352_v63 }
  0x65   : > { %3732 = vmatprep.mubr.msk.bf16.mxu0 %vm665_vm2, %v4691_v54  ;;  %v407_v58 = vmul.f32 15.0, %v353_v30  ;;  %v5363_v32 = vround.rtne.f32 %v4474_v35  ;;  %v607_v20 = vsel %vm534_vm1, %v605_v10, %v606_v13  ;;  %v609_v14 = vsel %vm534_vm1, %v606_v13, %v608_v26 }
  0x66   : > { %v1134_v4 = vsel %vm1091_vm3, %v1132_v1, %v1133_v60  ;;  %v4707_v19 = vpack.c.bf16 %v609_v14, %v607_v20  ;;  %v4709_v34 = vmul.f32 15.0, %v354_v11  ;;  %v4711_v29 = vround.rtne.f32 %v406_v31 }
  0x67   : > { %v1135_v8 = vrot.slane %v5363_v32, 2  ;;  %v4713_v43 = vround.rtne.f32 %v407_v58  ;;  %v1137_v63 = vrot.slane %v4525_v50, 2  ;;  %v1138_v35 = vrot.slane %v4532_v39, 2 }
  0x68   : > { %v5364_v10 = vround.rtne.f32 %v4523_v49  ;;  %3578 = vmatprep.mubr.msk.bf16.mxu1 %vm665_vm2, %v4707_v19  ;;  %v5344_v13 = vround.rtne.f32 %v4709_v34  ;;  %v610_v26 = vrot.slane %v4711_v29, 1  ;;  %v1142_v58 = vrot.slane %v4553_v45, 2 }
  0x69   : > { %v1136_v3 = vsel %vm1091_vm3, %v1133_v60, %v1135_v8  ;;  %v611_v1 = vrot.slane %v4713_v43, 1  ;;  %v1139_v60 = vsel %vm1091_vm3, %v1137_v63, %v1138_v35  ;;  %v1143_v49 = vrot.slane %v4559_v24, 2 }
  0x6a   : > { %v1140_v30 = vrot.slane %v5364_v10, 2  ;;  %v4725_v11 = vpack.c.bf16 %v1136_v3, %v1134_v4  ;;  %v613_v8 = vrot.slane %v5344_v13, 1  ;;  %v5365_v14 = vround.rtne.f32 %v4547_v22 }
  0x6b   : > { %v612_v32 = vsel %vm534_vm1, %v610_v26, %v611_v1  ;;  %v1144_v3 = vsel %vm1091_vm3, %v1142_v58, %v1143_v49  ;;  %v1147_v63 = vrot.slane %v4592_v59, 2  ;;  %v1153_v13 = vrot.slane %v4627_v7, 2 }
  0x6c   : > { %v1141_v31 = vsel %vm1091_vm3, %v1138_v35, %v1140_v30  ;;  %3733 = vmatmul.mubr.msk.bf16.gmra.mrb[12].mxu0 %vm665_vm2, %v4725_v11  ;;  %v1145_v4 = vrot.slane %v5365_v14, 2  ;;  %v1148_v35 = vrot.slane %v4597_v47, 2  ;;  %v614_v10 = vsel %vm534_vm1, %v611_v1, %v613_v8 }
  0x6d   : > { %v4736_v20 = vpack.c.bf16 %v1141_v31, %v1139_v60  ;;  %v469_v30 = vpack.c.bf16 %v4312_v41, %v4310_v40  ;;  %v5366_v60 = vround.rtne.f32 %v4590_v61  ;;  %v4751_v31 = vpack.c.bf16 %v614_v10, %v612_v32 }
  0x6e   : > { %v1146_v26 = vsel %vm1091_vm3, %v1143_v49, %v1145_v4  ;;  %v1149_v58 = vsel %vm1091_vm3, %v1147_v63, %v1148_v35  ;;  %v1152_v14 = vrot.slane %v4622_v18, 2  ;;  %v5367_v49 = vround.rtne.f32 %v4615_v56 }
  0x6f   : > { %3736 = vmatprep.mubr.msk.bf16.mxu0 %vm665_vm2, %v4736_v20  ;;  %v1150_v22 = vrot.slane %v5366_v60, 2  ;;  %v4755_v1 = vpack.c.bf16 %v1146_v26, %v1144_v3  ;;  %3579 = vmatmul.mubr.msk.bf16.gmra.mrb[28].mxu1 %vm665_vm2, %v4751_v31  ;;  %v1157_v32 = vrot.slane %v4654_v17, 2  ;;  %v1158_v63 = vrot.slane %v4656_v36, 2  ;;  %v247_v60 = vld [vmem:[%s4286_s28 + $0x180] sm:$0xff] }
  0x70   : > { %v1155_v4 = vrot.slane %v5367_v49, 2  ;;  %v5368_v10 = vround.rtne.f32 %v4652_v38  ;;  %3584 = vmatprep.mubr.msk.bf16.mxu1 %vm665_vm2, %v469_v30  ;;  %v4774_v56 = vpack.c.bf16 %v4413_v25, %v4411_v21  ;;  %v4791_v21 = vpack.c.bf16 %v4344_v6, %v4342_v5 }
  0x71   : > { %v1151_v8 = vsel %vm1091_vm3, %v1148_v35, %v1150_v22  ;;  %v1154_v35 = vsel %vm1091_vm3, %v1152_v14, %v1153_v13  ;;  %v248_v22 = vld [vmem:[%s4286_s28 + $0x188] sm:$0xff]  ;;  %v1159_v38 = vsel %vm1091_vm3, %v1157_v32, %v1158_v63  ;;  %v4800_v14 = vpack.c.bf16 %v4461_v46, %v4459_v37 }
  0x72   : > { %v4763_v61 = vpack.c.bf16 %v1151_v8, %v1149_v58  ;;  %v1160_v3 = vrot.slane %v5368_v10, 2  ;;  %v1156_v26 = vsel %vm1091_vm3, %v1153_v13, %v1155_v4  ;;  %v249_v58 = vld [vmem:[%s4286_s28 + $0x190] sm:$0x3]  ;;  %v1271_v8 = vsel %vm714_vm0, %v4351_v15, 0 }
  0x73   : > { %v4787_v13 = vpack.c.bf16 %v4446_v16, %v4443_v12  ;;  %v4795_v25 = vpack.c.bf16 %v1156_v26, %v1154_v35  ;;  %v1162_v15 = vrot.slane %v4679_v23, 2  ;;  %v1163_v49 = vrot.slane %v4687_v51, 2  ;;  %v4816_v26 = vld [vmem:[%s5307_s1 + $0xc] sm:$0xf] }
  0x74   : > { %3737 = vmatmul.mubr.msk.bf16.gmra.mrb[16].mxu0 %vm665_vm2, %v4755_v1  ;;  %v1161_v30 = vsel %vm1091_vm3, %v1158_v63, %v1160_v3  ;;  %v301_v4 = vmax.f32 %v247_v60, 0.0  ;;  %v302_v12 = vmax.f32 %v248_v22, 0.0  ;;  %v303_v16 = vmax.f32 %v249_v58, 0.0 }
  0x75   : > { %3740 = vmatprep.mubr.msk.bf16.mxu0 %vm665_vm2, %v4763_v61  ;;  %v4803_v32 = vpack.c.bf16 %v1161_v30, %v1159_v38  ;;  %v5369_v5 = vround.rtne.f32 %v4677_v2  ;;  %v1167_v63 = vrot.slane %v4711_v29, 2  ;;  %v4810_v10 = vpack.c.bf16 %v4489_v44, %v4485_v28 }
  0x76   : > { %v1168_v3 = vrot.slane %v4713_v43, 2  ;;  %v355_v37 = vmin.f32 %v301_v4, 1.0  ;;  %v356_v46 = vmin.f32 %v302_v12, 1.0  ;;  %v357_v35 = vmin.f32 %v303_v16, 1.0 }
  0x77   : > { %v1165_v6 = vrot.slane %v5369_v5, 2  ;;  %3585 = vmatmul.mubr.msk.bf16.vlgmr.msra.gmra.mrb[0].mxu1 %vm665_vm2, %v4329_v53  ;;  %v5370_v2 = vround.rtne.f32 %v4709_v34  ;;  %v4824_v28 = vpack.c.bf16 %v4532_v39, %v4525_v50  ;;  %v4828_v44 = vpack.c.bf16 %v4559_v24, %v4553_v45 }
  0x78   : > { %v4832_v22 = vpack.c.bf16 %v4597_v47, %v4592_v59  ;;  %3617 = vmatpush3.bf16.msra.mxu1 %v1271_v8  ;;  %3588 = vmatprep.mubr.msk.bf16.mxu1 %vm665_vm2, %v4791_v21  ;;  %v409_v58 = vmul.f32 15.0, %v355_v37  ;;  %v410_v38 = vmul.f32 15.0, %v356_v46  ;;  %v411_v34 = vmul.f32 15.0, %v357_v35 }
  0x79   : > { %v1170_v60 = vrot.slane %v5370_v2, 2  ;;  %v4838_v30 = vpack.c.bf16 %v4627_v7, %v4622_v18  ;;  %v4842_v50 = vpack.c.bf16 %v4656_v36, %v4654_v17  ;;  %v4846_v45 = vpack.c.bf16 %v4687_v51, %v4679_v23  ;;  %4115 = vmatprep.subr.msk.bf16.mxu1 %vm714_vm0, %v4816_v26 }
  0x7a   : > { %v4850_v39 = vpack.c.bf16 %v4713_v43, %v4711_v29  ;;  %v4856_v24 = vpack.c.bf16 %v4382_v52, %v4379_v9  ;;  %v1164_v17 = vsel %vm1091_vm3, %v1162_v15, %v1163_v49  ;;  %v1166_v59 = vsel %vm1091_vm3, %v1163_v49, %v1165_v6 }
  0x7b   : > { %v4864_v47 = vround.rtne.f32 %v409_v58  ;;  %v4866_v18 = vround.rtne.f32 %v410_v38  ;;  %v4173_v7 = vround.rtne.f32 %v411_v34  ;;  %v4870_v51 = vpack.c.bf16 %v4395_v0, %v4393_v62 }
  0x7c   : > { %3741 = vmatmul.mubr.msk.bf16.gmra.mrb[20].mxu0 %vm665_vm2, %v4795_v25  ;;  %v1169_v9 = vsel %vm1091_vm3, %v1167_v63, %v1168_v3  ;;  %v1171_v52 = vsel %vm1091_vm3, %v1168_v3, %v1170_v60  ;;  %v4874_v36 = vpack.c.bf16 %v1166_v59, %v1164_v17  ;;  %v2308_v63 = vsel %vm714_vm0, %v4568_v42, 0  ;;  %v3309_v3 = vld [vmem:[%s5307_s1 + $0x20] sm:$0xf]  ;;  %v4217_v17 = vld [vmem:[%s5307_s1 + $0x10] sm:$0xf] }
  0x7d   : > { %3744 = vmatprep.mubr.msk.bf16.mxu0 %vm665_vm2, %v4803_v32  ;;  %v4878_v43 = vpack.c.bf16 %v1171_v52, %v1169_v9  ;;  %v1880_v23 = vrot.slane %v4864_v47, 2  ;;  %v1881_v29 = vrot.slane %v4866_v18, 2  ;;  %v1883_v8 = vrot.slane %v4173_v7, 2 }
  0x7e   : > { %v1671_v49 = vrot.slane %v4864_v47, 1  ;;  %v1672_v4 = vrot.slane %v4866_v18, 1  ;;  %v1674_v12 = vrot.slane %v4173_v7, 1  ;;  %v5371_v42 = vround.rtne.f32 %v4303_v33 }
  0x7f   : > { %3589 = vmatmul.mubr.msk.bf16.gmra.mrb[4].mxu1 %vm665_vm2, %v4856_v24  ;;  %v1882_v62 = vsel %vm1091_vm3, %v1880_v23, %v1881_v29  ;;  %v1884_v0 = vsel %vm1091_vm3, %v1881_v29, %v1883_v8  ;;  %v1092_v46 = vrot.slane %v4310_v40, 2  ;;  %v1093_v35 = vrot.slane %v4312_v41, 2  ;;  %v250_v40 = vld [vmem:[%s4286_s28 + $0x198] sm:$0xff]  ;;  %v251_v41 = vld [vmem:[%s4286_s28 + $0x1a0] sm:$0xff] }
  0x80   : > { %3592 = vmatprep.mubr.msk.bf16.mxu1 %vm665_vm2, %v4870_v51  ;;  %v4890_v15 = vpack.c.bf16 %v1884_v0, %v1882_v62  ;;  %v1673_v16 = vsel %vm534_vm1, %v1671_v49, %v1672_v4  ;;  %v1675_v5 = vsel %vm534_vm1, %v1672_v4, %v1674_v12  ;;  %v1095_v37 = vrot.slane %v5371_v42, 2  ;;  %v5372_v8 = vld [vmem:[#allocation13_spill] sm:$0xff]  ;;  %v5375_v0 = vld [vmem:[#allocation4_spill] sm:$0xff]  ;;  %v5377_v4 = vld [vmem:[#allocation6_spill] sm:$0xff] }
  0x81   : > { %v4904_v6 = vpack.c.bf16 %v1675_v5, %v1673_v16  ;;  %v1094_v2 = vsel %vm1091_vm3, %v1092_v46, %v1093_v35  ;;  %v1473_v58 = vsel %vm714_vm0, %v4816_v26, 0  ;;  %v304_v38 = vmax.f32 %v250_v40, 0.0  ;;  %v5376_v49 = vld [vmem:[#allocation5_spill] sm:$0xff]  ;;  %v5378_v12 = vld [vmem:[#allocation7_spill] sm:$0xff]  ;;  %v5379_v16 = vld [vmem:[#allocation8_spill] sm:$0xff] }
  0x82   : > { %v1096_v60 = vsel %vm1091_vm3, %v1093_v35, %v1095_v37  ;;  %v305_v34 = vmax.f32 %v251_v41, 0.0  ;;  %v4977_v9 = vpack.c.bf16 %v4866_v18, %v4864_v47  ;;  %v5373_v47 = vld [vmem:[#allocation15_spill] sm:$0xff]  ;;  %v2517_v62 = vsel %vm714_vm0, %v3309_v3, 0  ;;  %v5380_v5 = vld [vmem:[#allocation9_spill] sm:$0xff]  ;;  %v5383_v46 = vld [vmem:[#allocation12_spill] sm:$0xff] }
  0x83   : > { %v1204_v33 = vpack.c.bf16 %v1096_v60, %v1094_v2  ;;  %v358_v59 = vmin.f32 %v304_v38, 1.0  ;;  %v5374_v18 = vld [vmem:[#allocation3_spill] sm:$0xff]  ;;  %v5384_v35 = vld [vmem:[#allocation14_spill] sm:$0xff]  ;;  %v5386_v40 = vld [vmem:[#allocation16_spill] sm:$0xff] }
  0x84   : > { %3745 = vmatmul.mubr.msk.bf16.gmra.mrb[24].mxu0 %vm665_vm2, %v4874_v36  ;;  %v359_v26 = vmin.f32 %v305_v34, 1.0  ;;  %v252_v42 = vld [vmem:[%s4286_s28 + $0x1a8] sm:$0x3] }
  0x85   : > { %3748 = vmatprep.mubr.msk.bf16.mxu0 %vm665_vm2, %v4878_v43  ;;  %v412_v7 = vmul.f32 15.0, %v358_v59  ;;  %v306_v37 = vmax.f32 %v252_v42, 0.0 }
  0x87   : > { %3593 = vmatmul.mubr.msk.bf16.gmra.mrb[8].mxu1 %vm665_vm2, %v4774_v56  ;;  %v4983_v52 = vround.rtne.f32 %v412_v7  ;;  %v360_v2 = vmin.f32 %v306_v37, 1.0 }
  0x88   : > { %3596 = vmatprep.mubr.msk.bf16.mxu1 %vm665_vm2, %v4787_v13 }
  0x89   : > { %v414_v60 = vmul.f32 15.0, %v360_v2  ;;  %v2294_v41 = vrot.slane %v4983_v52, 1 }
  0x8c   : > { %3749 = vmatmul.mubr.msk.bf16.gmra.mrb[28].mxu0 %vm665_vm2, %v4890_v15 }
  0x8d   : > { %3754 = vmatprep.mubr.msk.bf16.mxu0 %vm665_vm2, %v4791_v21 }
  0x8f   : > { %3597 = vmatmul.mubr.msk.bf16.gmra.mrb[12].mxu1 %vm665_vm2, %v4800_v14 }
  0x90   : > { %3600 = vmatprep.mubr.msk.bf16.mxu1 %vm665_vm2, %v4810_v10 }
  0x94   : > { %3755 = vmatmul.mubr.msk.bf16.vlgmr.msra.gmra.mrb[0].mxu0 %vm665_vm2, %v4856_v24 }
  0x95   : > { %3787 = vmatpush3.bf16.msra.mxu0 %v2308_v63  ;;  %3758 = vmatprep.mubr.msk.bf16.mxu0 %vm665_vm2, %v4870_v51  ;;  %v5381_v63 = vld [vmem:[#allocation10_spill] sm:$0xff] }
  0x96   : > { %4121 = vmatprep.subr.msk.bf16.mxu0 %vm714_vm0, %v3309_v3  ;;  %v5382_v3 = vld [vmem:[#allocation11_spill] sm:$0xff] }
  0x97   : > { %3601 = vmatmul.mubr.msk.bf16.gmra.mrb[16].mxu1 %vm665_vm2, %v4824_v28 }
  0x98   : > { %3604 = vmatprep.mubr.msk.bf16.mxu1 %vm665_vm2, %v4828_v44 }
  0x9c   : > { %3759 = vmatmul.mubr.msk.bf16.gmra.mrb[4].mxu0 %vm665_vm2, %v4774_v56 }
  0x9d   : > { %3762 = vmatprep.mubr.msk.bf16.mxu0 %vm665_vm2, %v4787_v13 }
  0x9f   : > { %3605 = vmatmul.mubr.msk.bf16.gmra.mrb[20].mxu1 %vm665_vm2, %v4832_v22 }
  0xa0   : > { %3608 = vmatprep.mubr.msk.bf16.mxu1 %vm665_vm2, %v4838_v30 }
  0xa4   : > { %3763 = vmatmul.mubr.msk.bf16.gmra.mrb[8].mxu0 %vm665_vm2, %v4800_v14 }
  0xa5   : > { %3766 = vmatprep.mubr.msk.bf16.mxu0 %vm665_vm2, %v4810_v10 }
  0xa7   : > { %3609 = vmatmul.mubr.msk.bf16.gmra.mrb[24].mxu1 %vm665_vm2, %v4842_v50 }
  0xa8   : > { %3612 = vmatprep.mubr.msk.bf16.mxu1 %vm665_vm2, %v4846_v45 }
  0xac   : > { %3767 = vmatmul.mubr.msk.bf16.gmra.mrb[12].mxu0 %vm665_vm2, %v4824_v28 }
  0xad   : > { %3770 = vmatprep.mubr.msk.bf16.mxu0 %vm665_vm2, %v4828_v44 }
  0xaf   : > { %3613 = vmatmul.mubr.msk.bf16.gmra.mrb[28].mxu1 %vm665_vm2, %v4850_v39 }
  0xb0   : > { %3618 = vmatprep.mubr.msk.bf16.mxu1 %vm665_vm2, %v1204_v33  ;;  %v5385_v33 = vld [vmem:[#allocation2_spill] sm:$0xff] }
  0xb4   : > { %3771 = vmatmul.mubr.msk.bf16.gmra.mrb[16].mxu0 %vm665_vm2, %v4832_v22 }
  0xb5   : > { %3774 = vmatprep.mubr.msk.bf16.mxu0 %vm665_vm2, %v4838_v30 }
  0xb7   : > { %3619 = vmatmul.mubr.msk.bf16.vlgmr.msra.gmra.mrb[0].mxu1 %vm665_vm2, %v4503_v57  ;;  %v413_v57 = vmul.f32 15.0, %v359_v26 }
  0xb8   : > { %3651 = vmatpush3.bf16.msra.mxu1 %v1473_v58  ;;  %3622 = vmatprep.mubr.msk.bf16.mxu1 %vm665_vm2, %v4519_v27 }
  0xb9   : > { %4117 = vmatprep.subr.msk.bf16.mxu1 %vm714_vm0, %v4217_v17  ;;  %v4985_v23 = vround.rtne.f32 %v413_v57 }
  0xbb   : > { %v2089_v29 = vpack.c.bf16 %v4985_v23, %v4983_v52 }
  0xbc   : > { %3775 = vmatmul.mubr.msk.bf16.gmra.mrb[20].mxu0 %vm665_vm2, %v4842_v50 }
  0xbd   : > { %3778 = vmatprep.mubr.msk.bf16.mxu0 %vm665_vm2, %v4846_v45 }
  0xbf   : > { %3623 = vmatmul.mubr.msk.bf16.gmra.mrb[4].mxu1 %vm665_vm2, %v4555_v48 }
  0xc0   : > { %3626 = vmatprep.mubr.msk.bf16.mxu1 %vm665_vm2, %v4599_v55 }
  0xc4   : > { %3779 = vmatmul.mubr.msk.bf16.gmra.mrb[24].mxu0 %vm665_vm2, %v4850_v39 }
  0xc5   : > { %3782 = vmatprep.mubr.msk.bf16.mxu0 %vm665_vm2, %v4977_v9 }
  0xc7   : > { %3627 = vmatmul.mubr.msk.bf16.gmra.mrb[8].mxu1 %vm665_vm2, %v5372_v8 }
  0xc8   : > { %3630 = vmatprep.mubr.msk.bf16.mxu1 %vm665_vm2, %v5373_v47 }
  0xcc   : > { %3783 = vmatmul.mubr.msk.bf16.gmra.mrb[28].mxu0 %vm665_vm2, %v2089_v29 }
  0xcd   : > { %3788 = vmatprep.mubr.msk.bf16.mxu0 %vm665_vm2, %v5374_v18 }
  0xcf   : > { %3631 = vmatmul.mubr.msk.bf16.gmra.mrb[12].mxu1 %vm665_vm2, %v4691_v54 }
  0xd0   : > { %3634 = vmatprep.mubr.msk.bf16.mxu1 %vm665_vm2, %v4725_v11 }
  0xd4   : > { %3789 = vmatmul.mubr.msk.bf16.vlgmr.msra.gmra.mrb[0].mxu0 %vm665_vm2, %v5375_v0 }
  0xd5   : > { %3821 = vmatpush3.bf16.msra.mxu0 %v2517_v62  ;;  %3792 = vmatprep.mubr.msk.bf16.mxu0 %vm665_vm2, %v5376_v49 }
  0xd7   : > { %3635 = vmatmul.mubr.msk.bf16.gmra.mrb[16].mxu1 %vm665_vm2, %v4736_v20 }
  0xd8   : > { %3638 = vmatprep.mubr.msk.bf16.mxu1 %vm665_vm2, %v4755_v1 }
  0xdc   : > { %3793 = vmatmul.mubr.msk.bf16.gmra.mrb[4].mxu0 %vm665_vm2, %v5377_v4 }
  0xdd   : > { %3796 = vmatprep.mubr.msk.bf16.mxu0 %vm665_vm2, %v5378_v12 }
  0xdf   : > { %3639 = vmatmul.mubr.msk.bf16.gmra.mrb[20].mxu1 %vm665_vm2, %v4763_v61 }
  0xe0   : > { %3642 = vmatprep.mubr.msk.bf16.mxu1 %vm665_vm2, %v4795_v25 }
  0xe4   : > { %3797 = vmatmul.mubr.msk.bf16.gmra.mrb[8].mxu0 %vm665_vm2, %v5379_v16 }
  0xe5   : > { %3800 = vmatprep.mubr.msk.bf16.mxu0 %vm665_vm2, %v5380_v5 }
  0xe7   : > { %3643 = vmatmul.mubr.msk.bf16.gmra.mrb[24].mxu1 %vm665_vm2, %v4803_v32 }
  0xe8   : > { %3646 = vmatprep.mubr.msk.bf16.mxu1 %vm665_vm2, %v4874_v36 }
  0xec   : > { %3801 = vmatmul.mubr.msk.bf16.gmra.mrb[12].mxu0 %vm665_vm2, %v5381_v63 }
  0xed   : > { %3804 = vmatprep.mubr.msk.bf16.mxu0 %vm665_vm2, %v5382_v3 }
  0xef   : > { %3647 = vmatmul.mubr.msk.bf16.gmra.mrb[28].mxu1 %vm665_vm2, %v4878_v43 }
  0xf0   : > { %3652 = vmatprep.mubr.msk.bf16.mxu1 %vm665_vm2, %v4329_v53  ;;  %v4176_v53 = vround.rtne.f32 %v414_v60 }
  0xf2   : > { %v2297_v58 = vrot.slane %v4176_v53, 1 }
  0xf4   : > { %3805 = vmatmul.mubr.msk.bf16.gmra.mrb[16].mxu0 %vm665_vm2, %v5383_v46 }
  0xf5   : > { %3808 = vmatprep.mubr.msk.bf16.mxu0 %vm665_vm2, %v5384_v35 }
  0xf7   : > { %3653 = vmatmul.mubr.msk.bf16.vlgmr.msra.gmra.mrb[0].mxu1 %vm665_vm2, %v4791_v21  ;;  %v2295_v21 = vrot.slane %v4985_v23, 1 }
  0xf8   : > { %3855 = vmatpush3.bf16.msra.mxu1 %v5385_v33  ;;  %3656 = vmatprep.mubr.msk.bf16.mxu1 %vm665_vm2, %v4856_v24 }
  0xf9   : > { %v2296_v24 = vsel %vm534_vm1, %v2294_v41, %v2295_v21  ;;  %v2298_v38 = vsel %vm534_vm1, %v2295_v21, %v2297_v58 }
  0xfa   : > { %v2301_v34 = vpack.c.bf16 %v2298_v38, %v2296_v24 }
  0xfc   : > { %3809 = vmatmul.mubr.msk.bf16.gmra.mrb[20].mxu0 %vm665_vm2, %v5386_v40 }
  0xfd   : > { %3812 = vmatprep.mubr.msk.bf16.mxu0 %vm665_vm2, %v4707_v19 }
  0xff   : > { %3657 = vmatmul.mubr.msk.bf16.gmra.mrb[4].mxu1 %vm665_vm2, %v4870_v51  ;;  %v5154_v51 = vld [vmem:[%s5308_s2] ss:$0 sm:$0xff] }
 0x100   : > { %3660 = vmatprep.mubr.msk.bf16.mxu1 %vm665_vm2, %v4774_v56 }
 0x104   : > { %3813 = vmatmul.mubr.msk.bf16.gmra.mrb[24].mxu0 %vm665_vm2, %v4751_v31 }
 0x105   : > { %3816 = vmatprep.mubr.msk.bf16.mxu0 %vm665_vm2, %v4904_v6 }
 0x107   : > { %3661 = vmatmul.mubr.msk.bf16.gmra.mrb[8].mxu1 %vm665_vm2, %v4787_v13 }
 0x108   : > { %3664 = vmatprep.mubr.msk.bf16.mxu1 %vm665_vm2, %v4800_v14 }
 0x10c   : > { %3817 = vmatmul.mubr.msk.bf16.gmra.mrb[28].mxu0 %vm665_vm2, %v2301_v34 }
 0x10d   : > { %3822 = vmatprep.mubr.msk.bf16.mxu0 %vm665_vm2, %v4519_v27  ;;  %v2504_v27 = vrot.slane %v4985_v23, 2 }
 0x10f   : > { %3665 = vmatmul.mubr.msk.bf16.gmra.mrb[12].mxu1 %vm665_vm2, %v4810_v10 }
 0x110   : > { %3668 = vmatprep.mubr.msk.bf16.mxu1 %vm665_vm2, %v4824_v28 }
 0x114   : > { %3823 = vmatmul.mubr.msk.bf16.vlgmr.msra.gmra.mrb[0].mxu0 %vm665_vm2, %v4555_v48  ;;  %v2503_v48 = vrot.slane %v4983_v52, 2 }
 0x115   : > { %3826 = vmatprep.mubr.msk.bf16.mxu0 %vm665_vm2, %v4599_v55  ;;  %v2506_v55 = vrot.slane %v4176_v53, 2 }
 0x117   : > { %3669 = vmatmul.mubr.msk.bf16.gmra.mrb[16].mxu1 %vm665_vm2, %v4828_v44 }
 0x118   : > { %3672 = vmatprep.mubr.msk.bf16.mxu1 %vm665_vm2, %v4832_v22 }
 0x11c   : > { %3827 = vmatmul.mubr.msk.bf16.gmra.mrb[4].mxu0 %vm665_vm2, %v5372_v8 }
 0x11d   : > { %3830 = vmatprep.mubr.msk.bf16.mxu0 %vm665_vm2, %v5373_v47 }
 0x11f   : > { %3673 = vmatmul.mubr.msk.bf16.gmra.mrb[20].mxu1 %vm665_vm2, %v4838_v30 }
 0x120   : > { %3676 = vmatprep.mubr.msk.bf16.mxu1 %vm665_vm2, %v4842_v50 }
 0x124   : > { %3831 = vmatmul.mubr.msk.bf16.gmra.mrb[8].mxu0 %vm665_vm2, %v4691_v54  ;;  %v2505_v54 = vsel %vm1091_vm3, %v2503_v48, %v2504_v27 }
 0x125   : > { %3834 = vmatprep.mubr.msk.bf16.mxu0 %vm665_vm2, %v4725_v11  ;;  %v2507_v11 = vsel %vm1091_vm3, %v2504_v27, %v2506_v55 }
 0x127   : > { %3677 = vmatmul.mubr.msk.bf16.gmra.mrb[24].mxu1 %vm665_vm2, %v4846_v45 }
 0x128   : > { %3680 = vmatprep.mubr.msk.bf16.mxu1 %vm665_vm2, %v4850_v39 }
 0x12c   : > { %3835 = vmatmul.mubr.msk.bf16.gmra.mrb[12].mxu0 %vm665_vm2, %v4736_v20  ;;  %v2510_v20 = vpack.c.bf16 %v2507_v11, %v2505_v54 }
 0x12d   : > { %3838 = vmatprep.mubr.msk.bf16.mxu0 %vm665_vm2, %v4755_v1 }
 0x12f   : > { %3681 = vmatmul.mubr.msk.bf16.gmra.mrb[28].mxu1 %vm665_vm2, %v4977_v9 }
 0x130   : > { %3702 = vmatprep.mubr.msk.bf16.mxu1 %vm665_vm2, %v5381_v63 }
 0x134   : > { %3839 = vmatmul.mubr.msk.bf16.gmra.mrb[16].mxu0 %vm665_vm2, %v4763_v61 }
 0x135   : > { %3842 = vmatprep.mubr.msk.bf16.mxu0 %vm665_vm2, %v4795_v25 }
 0x137   : > { %3703 = vmatmul.mubr.msk.bf16.vlgmr.msra.gmra.mrb[16].mxu1 %vm665_vm2, %v5382_v3 }
 0x138   : > { %3706 = vmatprep.mubr.msk.bf16.mxu1 %vm665_vm2, %v5383_v46 }
 0x13c   : > { %3843 = vmatmul.mubr.msk.bf16.gmra.mrb[20].mxu0 %vm665_vm2, %v4803_v32 }
 0x13d   : > { %3846 = vmatprep.mubr.msk.bf16.mxu0 %vm665_vm2, %v4874_v36 }
 0x13f   : > { %3707 = vmatmul.mubr.msk.bf16.gmra.mrb[20].mxu1 %vm665_vm2, %v5384_v35 }
 0x140   : > { %3710 = vmatprep.mubr.msk.bf16.mxu1 %vm665_vm2, %v5386_v40 }
 0x144   : > { %3847 = vmatmul.mubr.msk.bf16.gmra.mrb[24].mxu0 %vm665_vm2, %v4878_v43 }
 0x145   : > { %3850 = vmatprep.mubr.msk.bf16.mxu0 %vm665_vm2, %v4890_v15  ;;  %v5159_v15 = vld [vmem:[%s5309_s3] ss:$0 sm:$0xff] }
 0x147   : > { %3711 = vmatmul.mubr.msk.bf16.gmra.mrb[24].mxu1 %vm665_vm2, %v4707_v19 }
 0x148   : > { %3714 = vmatprep.mubr.msk.bf16.mxu1 %vm665_vm2, %v4751_v31 }
 0x14c   : > { %3851 = vmatmul.mubr.msk.bf16.gmra.mrb[28].mxu0 %vm665_vm2, %v2510_v20 }
 0x14f   : > { %3715 = vmatmul.mubr.msk.bf16.gmra.mrb[28].mxu1 %vm665_vm2, %v4904_v6 }
 0x1ca   : > { %v3654_v1 = vpop.f32.mrb[0].mxu1 }
 0x1cb   : > { %v1509_v61 = vpop.f32.mrb[1].mxu1 }
 0x1cc   : > { %v3655_v56 = vpop.f32.mrb[2].mxu1 }
 0x1cd   : > { %v1512_v13 = vpop.f32.mrb[3].mxu1 }
 0x1d2   : > { %v3658_v25 = vpop.f32.mrb[4].mxu1 }
 0x1d3   : > { %v1525_v14 = vpop.f32.mrb[5].mxu1 }
 0x1d4   : > { %v3659_v32 = vpop.f32.mrb[6].mxu1 }
 0x1d5   : > { %v1528_v10 = vpop.f32.mrb[7].mxu1 }
 0x1da   : > { %v5135_v28 = vpop.f32.mrb[8].mxu1 }
 0x1db   : > { %v5137_v44 = vpop.f32.mrb[9].mxu1 }
 0x1dc   : > { %v5139_v19 = vpop.f32.mrb[10].mxu1 }
 0x1dd   : > { %v5141_v31 = vpop.f32.mrb[11].mxu1 }
 0x1e2   : > { %v5143_v22 = vpop.f32.mrb[12].mxu1 }
 0x1e3   : > { %v5145_v30 = vpop.f32.mrb[13].mxu1 }
 0x1e4   : > { %v5147_v50 = vpop.f32.mrb[14].mxu1 }
 0x1e5   : > { %v5149_v45 = vpop.f32.mrb[15].mxu1 }
 0x1e7   : > { %v3824_v39 = vpop.f32.mrb[0].mxu0 }
 0x1e8   : > { %v3856_v36 = vadd.f32 %v3824_v39, %v3654_v1  ;;  %v2553_v43 = vpop.f32.mrb[1].mxu0 }
 0x1e9   : > { %v3857_v6 = vadd.f32 %v2553_v43, %v1509_v61  ;;  %v3825_v17 = vpop.f32.mrb[2].mxu0 }
 0x1ea   : > { %v2721_v59 = vmul.f32 %v3856_v36, %v5154_v51  ;;  %v3858_v26 = vadd.f32 %v3825_v17, %v3655_v56  ;;  %v2556_v7 = vpop.f32.mrb[3].mxu0 }
 0x1eb   : > { %v2719_v57 = vmul.f32 %v3857_v6, %v5154_v51  ;;  %v3859_v9 = vadd.f32 %v2556_v7, %v1512_v13 }
 0x1ec   : > { %v2760_v52 = vadd.f32 %v5159_v15, %v2721_v59  ;;  %v2722_v23 = vmul.f32 %v3858_v26, %v5154_v51 }
 0x1ed   : > { %v2758_v29 = vadd.f32 %v5159_v15, %v2719_v57  ;;  %v2720_v8 = vmul.f32 %v3859_v9, %v5154_v51 }
 0x1ee   : > { %v2792_v47 = vmax.f32 %v2760_v52, 0.0  ;;  %v2761_v18 = vadd.f32 %v5159_v15, %v2722_v23 }
 0x1ef   : > { %v2790_v62 = vmax.f32 %v2758_v29, 0.0  ;;  %v2759_v0 = vadd.f32 %v5159_v15, %v2720_v8  ;;  %v3828_v49 = vpop.f32.mrb[4].mxu0 }
 0x1f0   : > { %v2824_v4 = vmax.f32 %v2792_v47, 0.0  ;;  %v2793_v12 = vmax.f32 %v2761_v18, 0.0  ;;  %v3860_v16 = vadd.f32 %v3828_v49, %v3658_v25  ;;  %v2569_v5 = vpop.f32.mrb[5].mxu0 }
 0x1f1   : > { %v2822_v63 = vmax.f32 %v2790_v62, 0.0  ;;  %v2791_v3 = vmax.f32 %v2759_v0, 0.0  ;;  %v3861_v42 = vadd.f32 %v2569_v5, %v1525_v14  ;;  %v3829_v37 = vpop.f32.mrb[6].mxu0 }
 0x1f2   : > { %v2856_v46 = vmin.f32 %v2824_v4, 1.0  ;;  %v2825_v35 = vmax.f32 %v2793_v12, 0.0  ;;  %v2725_v2 = vmul.f32 %v3860_v16, %v5154_v51  ;;  %v3862_v60 = vadd.f32 %v3829_v37, %v3659_v32  ;;  %v2572_v33 = vpop.f32.mrb[7].mxu0 }
 0x1f3   : > { %v2854_v40 = vmin.f32 %v2822_v63, 1.0  ;;  %v2823_v53 = vmax.f32 %v2791_v3, 0.0  ;;  %v2723_v41 = vmul.f32 %v3861_v42, %v5154_v51  ;;  %v3863_v21 = vadd.f32 %v2572_v33, %v1528_v10 }
 0x1f4   : > { %v2888_v58 = vmul.f32 15.0, %v2856_v46  ;;  %v2857_v24 = vmin.f32 %v2825_v35, 1.0  ;;  %v2764_v38 = vadd.f32 %v5159_v15, %v2725_v2  ;;  %v2726_v34 = vmul.f32 %v3862_v60, %v5154_v51 }
 0x1f5   : > { %v2886_v48 = vmul.f32 15.0, %v2854_v40  ;;  %v2855_v27 = vmin.f32 %v2823_v53, 1.0  ;;  %v2762_v55 = vadd.f32 %v5159_v15, %v2723_v41  ;;  %v2724_v54 = vmul.f32 %v3863_v21, %v5154_v51 }
 0x1f6   : > { %v4179_v11 = vround.rtne.f32 %v2888_v58  ;;  %v2889_v20 = vmul.f32 15.0, %v2857_v24  ;;  %v2796_v1 = vmax.f32 %v2764_v38, 0.0  ;;  %v2765_v61 = vadd.f32 %v5159_v15, %v2726_v34 }
 0x1f7   : > { %v4177_v56 = vround.rtne.f32 %v2886_v48  ;;  %v2887_v13 = vmul.f32 15.0, %v2855_v27  ;;  %v2794_v25 = vmax.f32 %v2762_v55, 0.0  ;;  %v2763_v14 = vadd.f32 %v5159_v15, %v2724_v54  ;;  %v3832_v32 = vpop.f32.mrb[8].mxu0 }
 0x1f8   : > { %v3365_v10 = vpack.c.bf16 %v4179_v11, %v4179_v11  ;;  %v4180_v39 = vround.rtne.f32 %v2889_v20  ;;  %v2828_v36 = vmax.f32 %v2796_v1, 0.0  ;;  %v2797_v43 = vmax.f32 %v2765_v61, 0.0  ;;  %v2585_v6 = vpop.f32.mrb[9].mxu0 }
 0x1f9   : > { %v3363_v17 = vpack.c.bf16 %v4177_v56, %v4177_v56  ;;  %v4178_v59 = vround.rtne.f32 %v2887_v13  ;;  %v2826_v26 = vmax.f32 %v2794_v25, 0.0  ;;  %v2795_v7 = vmax.f32 %v2763_v14, 0.0  ;;  %v3833_v57 = vpop.f32.mrb[10].mxu0 }
 0x1fa   : > { %3081 = vst.msk [vmem:[%s5180_s16 + $0x8] sm:$0xf] %vm3078_vm4, %v3365_v10  ;;  %v3366_v9 = vpack.c.bf16 %v4180_v39, %v4180_v39  ;;  %v2860_v52 = vmin.f32 %v2828_v36, 1.0  ;;  %v2829_v23 = vmax.f32 %v2797_v43, 0.0  ;;  %v3864_v29 = vadd.f32 %v3832_v32, %v5135_v28  ;;  %v2588_v8 = vpop.f32.mrb[11].mxu0 }
 0x1fb   : > { %3079 = vst.msk [vmem:[%s5180_s16] sm:$0xf] %vm3078_vm4, %v3363_v17  ;;  %v3364_v47 = vpack.c.bf16 %v4178_v59, %v4178_v59  ;;  %v2858_v18 = vmin.f32 %v2826_v26, 1.0  ;;  %v2827_v62 = vmax.f32 %v2795_v7, 0.0  ;;  %v3865_v0 = vadd.f32 %v2585_v6, %v5137_v44 }
 0x1fc   : > { %3082 = vst.msk [vmem:[%s5180_s16 + $0xc] sm:$0xf] %vm3078_vm4, %v3366_v9  ;;  %v2892_v49 = vmul.f32 15.0, %v2860_v52  ;;  %v2861_v4 = vmin.f32 %v2829_v23, 1.0  ;;  %v2729_v12 = vmul.f32 %v3864_v29, %v5154_v51  ;;  %v3866_v16 = vadd.f32 %v3833_v57, %v5139_v19 }
 0x1fd   : > { %3080 = vst.msk [vmem:[%s5180_s16 + $0x4] sm:$0xf] %vm3078_vm4, %v3364_v47  ;;  %v2890_v5 = vmul.f32 15.0, %v2858_v18  ;;  %v2859_v28 = vmin.f32 %v2827_v62, 1.0  ;;  %v2727_v63 = vmul.f32 %v3865_v0, %v5154_v51  ;;  %v3867_v3 = vadd.f32 %v2588_v8, %v5141_v31 }
 0x1fe   : > { %v4183_v42 = vround.rtne.f32 %v2892_v49  ;;  %v2893_v37 = vmul.f32 15.0, %v2861_v4  ;;  %v2768_v44 = vadd.f32 %v5159_v15, %v2729_v12  ;;  %v2730_v46 = vmul.f32 %v3866_v16, %v5154_v51 }
 0x1ff   : > { %v4181_v35 = vround.rtne.f32 %v2890_v5  ;;  %v2891_v2 = vmul.f32 15.0, %v2859_v28  ;;  %v2766_v60 = vadd.f32 %v5159_v15, %v2727_v63  ;;  %v2728_v19 = vmul.f32 %v3867_v3, %v5154_v51  ;;  %v3836_v33 = vpop.f32.mrb[12].mxu0 }
 0x200   : > { %v3369_v40 = vpack.c.bf16 %v4183_v42, %v4183_v42  ;;  %v4184_v53 = vround.rtne.f32 %v2893_v37  ;;  %v2800_v41 = vmax.f32 %v2768_v44, 0.0  ;;  %v2769_v31 = vadd.f32 %v5159_v15, %v2730_v46  ;;  %v2601_v21 = vpop.f32.mrb[13].mxu0 }
 0x201   : > { %v3367_v58 = vpack.c.bf16 %v4181_v35, %v4181_v35  ;;  %v4182_v24 = vround.rtne.f32 %v2891_v2  ;;  %v2798_v38 = vmax.f32 %v2766_v60, 0.0  ;;  %v2767_v34 = vadd.f32 %v5159_v15, %v2728_v19  ;;  %v3837_v48 = vpop.f32.mrb[14].mxu0 }
 0x202   : > { %3085 = vst.msk [vmem:[%s5180_s16 + $0x18] sm:$0xf] %vm3078_vm4, %v3369_v40  ;;  %v3370_v27 = vpack.c.bf16 %v4184_v53, %v4184_v53  ;;  %v2832_v55 = vmax.f32 %v2800_v41, 0.0  ;;  %v2801_v54 = vmax.f32 %v2769_v31, 0.0  ;;  %v3868_v11 = vadd.f32 %v3836_v33, %v5143_v22  ;;  %v2604_v20 = vpop.f32.mrb[15].mxu0 }
 0x203   : > { %3083 = vst.msk [vmem:[%s5180_s16 + $0x10] sm:$0xf] %vm3078_vm4, %v3367_v58  ;;  %v3368_v1 = vpack.c.bf16 %v4182_v24, %v4182_v24  ;;  %v2830_v61 = vmax.f32 %v2798_v38, 0.0  ;;  %v2799_v56 = vmax.f32 %v2767_v34, 0.0  ;;  %v3869_v13 = vadd.f32 %v2601_v21, %v5145_v30 }
 0x204   : > { %3086 = vst.msk [vmem:[%s5180_s16 + $0x1c] sm:$0xf] %vm3078_vm4, %v3370_v27  ;;  %v2864_v25 = vmin.f32 %v2832_v55, 1.0  ;;  %v2833_v14 = vmax.f32 %v2801_v54, 0.0  ;;  %v2733_v32 = vmul.f32 %v3868_v11, %v5154_v51  ;;  %v3870_v10 = vadd.f32 %v3837_v48, %v5147_v50 }
 0x205   : > { %3084 = vst.msk [vmem:[%s5180_s16 + $0x14] sm:$0xf] %vm3078_vm4, %v3368_v1  ;;  %v2862_v39 = vmin.f32 %v2830_v61, 1.0  ;;  %v2831_v22 = vmax.f32 %v2799_v56, 0.0  ;;  %v2731_v36 = vmul.f32 %v3869_v13, %v5154_v51  ;;  %v3871_v43 = vadd.f32 %v2604_v20, %v5149_v45 }
 0x206   : > { %v2896_v6 = vmul.f32 15.0, %v2864_v25  ;;  %v2865_v17 = vmin.f32 %v2833_v14, 1.0  ;;  %v2772_v30 = vadd.f32 %v5159_v15, %v2733_v32  ;;  %v2734_v59 = vmul.f32 %v3870_v10, %v5154_v51 }
 0x207   : > { %v2894_v26 = vmul.f32 15.0, %v2862_v39  ;;  %v2863_v7 = vmin.f32 %v2831_v22, 1.0  ;;  %v2770_v57 = vadd.f32 %v5159_v15, %v2731_v36  ;;  %v2732_v50 = vmul.f32 %v3871_v43, %v5154_v51  ;;  %v3840_v9 = vpop.f32.mrb[16].mxu0 }
 0x208   : > { %v4187_v52 = vround.rtne.f32 %v2896_v6  ;;  %v2897_v23 = vmul.f32 15.0, %v2865_v17  ;;  %v2804_v29 = vmax.f32 %v2772_v30, 0.0  ;;  %v2773_v8 = vadd.f32 %v5159_v15, %v2734_v59  ;;  %v2617_v45 = vpop.f32.mrb[17].mxu0 }
 0x209   : > { %v4185_v47 = vround.rtne.f32 %v2894_v26  ;;  %v2895_v18 = vmul.f32 15.0, %v2863_v7  ;;  %v2802_v62 = vmax.f32 %v2770_v57, 0.0  ;;  %v2771_v0 = vadd.f32 %v5159_v15, %v2732_v50  ;;  %v3841_v49 = vpop.f32.mrb[18].mxu0 }
 0x20a   : > { %v3373_v4 = vpack.c.bf16 %v4187_v52, %v4187_v52  ;;  %v4188_v12 = vround.rtne.f32 %v2897_v23  ;;  %v2836_v16 = vmax.f32 %v2804_v29, 0.0  ;;  %v2805_v5 = vmax.f32 %v2773_v8, 0.0  ;;  %v2620_v28 = vpop.f32.mrb[19].mxu0  ;;  %v3704_v2 = vpop.f32.mrb[16].mxu1 }
 0x20b   : > { %v3371_v63 = vpack.c.bf16 %v4185_v47, %v4185_v47  ;;  %v4186_v3 = vround.rtne.f32 %v2895_v18  ;;  %v2834_v42 = vmax.f32 %v2802_v62, 0.0  ;;  %v2803_v37 = vmax.f32 %v2771_v0, 0.0  ;;  %v1785_v53 = vpop.f32.mrb[17].mxu1 }
 0x20c   : > { %3089 = vst.msk [vmem:[%s5180_s16 + $0x28] sm:$0xf] %vm3078_vm4, %v3373_v4  ;;  %v3374_v44 = vpack.c.bf16 %v4188_v12, %v4188_v12  ;;  %v2868_v46 = vmin.f32 %v2836_v16, 1.0  ;;  %v2837_v35 = vmax.f32 %v2805_v5, 0.0  ;;  %v3872_v40 = vadd.f32 %v3840_v9, %v3704_v2  ;;  %v3705_v58 = vpop.f32.mrb[18].mxu1 }
 0x20d   : > { %3087 = vst.msk [vmem:[%s5180_s16 + $0x20] sm:$0xf] %vm3078_vm4, %v3371_v63  ;;  %v3372_v60 = vpack.c.bf16 %v4186_v3, %v4186_v3  ;;  %v2866_v19 = vmin.f32 %v2834_v42, 1.0  ;;  %v2835_v33 = vmax.f32 %v2803_v37, 0.0  ;;  %v3873_v21 = vadd.f32 %v2617_v45, %v1785_v53  ;;  %v1788_v27 = vpop.f32.mrb[19].mxu1 }
 0x20e   : > { %3090 = vst.msk [vmem:[%s5180_s16 + $0x2c] sm:$0xf] %vm3078_vm4, %v3374_v44  ;;  %v2900_v41 = vmul.f32 15.0, %v2868_v46  ;;  %v2869_v31 = vmin.f32 %v2837_v35, 1.0  ;;  %v2737_v34 = vmul.f32 %v3872_v40, %v5154_v51  ;;  %v3874_v48 = vadd.f32 %v3841_v49, %v3705_v58 }
 0x20f   : > { %3088 = vst.msk [vmem:[%s5180_s16 + $0x24] sm:$0xf] %vm3078_vm4, %v3372_v60  ;;  %v2898_v24 = vmul.f32 15.0, %v2866_v19  ;;  %v2867_v38 = vmin.f32 %v2835_v33, 1.0  ;;  %v3844_v55 = vpop.f32.mrb[20].mxu0  ;;  %v2735_v20 = vmul.f32 %v3873_v21, %v5154_v51  ;;  %v3875_v1 = vadd.f32 %v2620_v28, %v1788_v27 }
 0x210   : > { %v4191_v54 = vround.rtne.f32 %v2900_v41  ;;  %v2901_v11 = vmul.f32 15.0, %v2869_v31  ;;  %v2633_v61 = vpop.f32.mrb[21].mxu0  ;;  %v2776_v25 = vadd.f32 %v5159_v15, %v2737_v34  ;;  %v2738_v14 = vmul.f32 %v3874_v48, %v5154_v51 }
 0x211   : > { %v4189_v56 = vround.rtne.f32 %v2898_v24  ;;  %v2899_v13 = vmul.f32 15.0, %v2867_v38  ;;  %v3845_v32 = vpop.f32.mrb[22].mxu0  ;;  %v2774_v22 = vadd.f32 %v5159_v15, %v2735_v20  ;;  %v2736_v36 = vmul.f32 %v3875_v1, %v5154_v51 }
 0x212   : > { %v3377_v10 = vpack.c.bf16 %v4191_v54, %v4191_v54  ;;  %v4192_v39 = vround.rtne.f32 %v2901_v11  ;;  %v2636_v43 = vpop.f32.mrb[23].mxu0  ;;  %v2808_v30 = vmax.f32 %v2776_v25, 0.0  ;;  %v2777_v59 = vadd.f32 %v5159_v15, %v2738_v14  ;;  %v3708_v50 = vpop.f32.mrb[20].mxu1 }
 0x213   : > { %v3375_v6 = vpack.c.bf16 %v4189_v56, %v4189_v56  ;;  %v4190_v17 = vround.rtne.f32 %v2899_v13  ;;  %v2806_v7 = vmax.f32 %v2774_v22, 0.0  ;;  %v2775_v57 = vadd.f32 %v5159_v15, %v2736_v36  ;;  %v1801_v8 = vpop.f32.mrb[21].mxu1 }
 0x214   : > { %3093 = vst.msk [vmem:[%s5180_s16 + $0x38] sm:$0xf] %vm3078_vm4, %v3377_v10  ;;  %v3378_v26 = vpack.c.bf16 %v4192_v39, %v4192_v39  ;;  %v2840_v52 = vmax.f32 %v2808_v30, 0.0  ;;  %v2809_v23 = vmax.f32 %v2777_v59, 0.0  ;;  %v3876_v29 = vadd.f32 %v3844_v55, %v3708_v50  ;;  %v3709_v62 = vpop.f32.mrb[22].mxu1 }
 0x215   : > { %3091 = vst.msk [vmem:[%s5180_s16 + $0x30] sm:$0xf] %vm3078_vm4, %v3375_v6  ;;  %v3376_v9 = vpack.c.bf16 %v4190_v17, %v4190_v17  ;;  %v2838_v45 = vmax.f32 %v2806_v7, 0.0  ;;  %v2807_v47 = vmax.f32 %v2775_v57, 0.0  ;;  %v3877_v18 = vadd.f32 %v2633_v61, %v1801_v8  ;;  %v1804_v16 = vpop.f32.mrb[23].mxu1 }
 0x216   : > { %3094 = vst.msk [vmem:[%s5180_s16 + $0x3c] sm:$0xf] %vm3078_vm4, %v3378_v26  ;;  %v2872_v0 = vmin.f32 %v2840_v52, 1.0  ;;  %v2841_v49 = vmax.f32 %v2809_v23, 0.0  ;;  %v2741_v4 = vmul.f32 %v3876_v29, %v5154_v51  ;;  %v3878_v12 = vadd.f32 %v3845_v32, %v3709_v62 }
 0x217   : > { %3092 = vst.msk [vmem:[%s5180_s16 + $0x34] sm:$0xf] %vm3078_vm4, %v3376_v9  ;;  %v3848_v5 = vpop.f32.mrb[24].mxu0  ;;  %v2870_v28 = vmin.f32 %v2838_v45, 1.0  ;;  %v2839_v63 = vmax.f32 %v2807_v47, 0.0  ;;  %v2739_v3 = vmul.f32 %v3877_v18, %v5154_v51  ;;  %v3879_v42 = vadd.f32 %v2636_v43, %v1804_v16 }
 0x218   : > { %v2649_v37 = vpop.f32.mrb[25].mxu0  ;;  %v2904_v44 = vmul.f32 15.0, %v2872_v0  ;;  %v2873_v46 = vmin.f32 %v2841_v49, 1.0  ;;  %v2780_v35 = vadd.f32 %v5159_v15, %v2741_v4  ;;  %v2742_v2 = vmul.f32 %v3878_v12, %v5154_v51 }
 0x219   : > { %v3849_v60 = vpop.f32.mrb[26].mxu0  ;;  %v2902_v19 = vmul.f32 15.0, %v2870_v28  ;;  %v2871_v33 = vmin.f32 %v2839_v63, 1.0  ;;  %v2778_v40 = vadd.f32 %v5159_v15, %v2739_v3  ;;  %v2740_v53 = vmul.f32 %v3879_v42, %v5154_v51 }
 0x21a   : > { %v2652_v41 = vpop.f32.mrb[27].mxu0  ;;  %v4195_v31 = vround.rtne.f32 %v2904_v44  ;;  %v2905_v21 = vmul.f32 15.0, %v2873_v46  ;;  %v2812_v58 = vmax.f32 %v2780_v35, 0.0  ;;  %v2781_v24 = vadd.f32 %v5159_v15, %v2742_v2  ;;  %v3712_v55 = vpop.f32.mrb[24].mxu1 }
 0x21b   : > { %v4193_v38 = vround.rtne.f32 %v2902_v19  ;;  %v2903_v34 = vmul.f32 15.0, %v2871_v33  ;;  %v2810_v48 = vmax.f32 %v2778_v40, 0.0  ;;  %v2779_v27 = vadd.f32 %v5159_v15, %v2740_v53  ;;  %v1817_v61 = vpop.f32.mrb[25].mxu1 }
 0x21c   : > { %v3381_v54 = vpack.c.bf16 %v4195_v31, %v4195_v31  ;;  %v4196_v11 = vround.rtne.f32 %v2905_v21  ;;  %v2844_v20 = vmax.f32 %v2812_v58, 0.0  ;;  %v2813_v1 = vmax.f32 %v2781_v24, 0.0  ;;  %v3713_v32 = vpop.f32.mrb[26].mxu1 }
 0x21d   : > { %v3379_v56 = vpack.c.bf16 %v4193_v38, %v4193_v38  ;;  %v4194_v13 = vround.rtne.f32 %v2903_v34  ;;  %v2842_v25 = vmax.f32 %v2810_v48, 0.0  ;;  %v2811_v14 = vmax.f32 %v2779_v27, 0.0  ;;  %v1820_v43 = vpop.f32.mrb[27].mxu1 }
 0x21e   : > { %3097 = vst.msk [vmem:[%s5180_s16 + $0x48] sm:$0xf] %vm3078_vm4, %v3381_v54  ;;  %v3382_v10 = vpack.c.bf16 %v4196_v11, %v4196_v11  ;;  %v2876_v39 = vmin.f32 %v2844_v20, 1.0  ;;  %v2845_v22 = vmax.f32 %v2813_v1, 0.0  ;;  %v3880_v36 = vadd.f32 %v3848_v5, %v3712_v55 }
 0x21f   : > { %v3852_v6 = vpop.f32.mrb[28].mxu0  ;;  %3095 = vst.msk [vmem:[%s5180_s16 + $0x40] sm:$0xf] %vm3078_vm4, %v3379_v56  ;;  %v3380_v17 = vpack.c.bf16 %v4194_v13, %v4194_v13  ;;  %v2874_v30 = vmin.f32 %v2842_v25, 1.0  ;;  %v2843_v59 = vmax.f32 %v2811_v14, 0.0  ;;  %v3881_v26 = vadd.f32 %v2649_v37, %v1817_v61 }
 0x220   : > { %v2665_v7 = vpop.f32.mrb[29].mxu0  ;;  %3098 = vst.msk [vmem:[%s5180_s16 + $0x4c] sm:$0xf] %vm3078_vm4, %v3382_v10  ;;  %v2908_v57 = vmul.f32 15.0, %v2876_v39  ;;  %v2877_v50 = vmin.f32 %v2845_v22, 1.0  ;;  %v2745_v9 = vmul.f32 %v3880_v36, %v5154_v51  ;;  %v3882_v52 = vadd.f32 %v3849_v60, %v3713_v32 }
 0x221   : > { %v3853_v23 = vpop.f32.mrb[30].mxu0  ;;  %3096 = vst.msk [vmem:[%s5180_s16 + $0x44] sm:$0xf] %vm3078_vm4, %v3380_v17  ;;  %v2906_v29 = vmul.f32 15.0, %v2874_v30  ;;  %v2875_v8 = vmin.f32 %v2843_v59, 1.0  ;;  %v2743_v45 = vmul.f32 %v3881_v26, %v5154_v51  ;;  %v3883_v47 = vadd.f32 %v2652_v41, %v1820_v43 }
 0x222   : > { %v2668_v18 = vpop.f32.mrb[31].mxu0  ;;  %v4199_v62 = vround.rtne.f32 %v2908_v57  ;;  %v2909_v0 = vmul.f32 15.0, %v2877_v50  ;;  %v2784_v49 = vadd.f32 %v5159_v15, %v2745_v9  ;;  %v2746_v4 = vmul.f32 %v3882_v52, %v5154_v51  ;;  %v3716_v63 = vpop.f32.mrb[28].mxu1 }
 0x223   : > { %v4197_v12 = vround.rtne.f32 %v2906_v29  ;;  %v2907_v16 = vmul.f32 15.0, %v2875_v8  ;;  %v2782_v5 = vadd.f32 %v5159_v15, %v2743_v45  ;;  %v2744_v28 = vmul.f32 %v3883_v47, %v5154_v51  ;;  %v1833_v46 = vpop.f32.mrb[29].mxu1 }
 0x224   : > { %v3385_v3 = vpack.c.bf16 %v4199_v62, %v4199_v62  ;;  %v4200_v42 = vround.rtne.f32 %v2909_v0  ;;  %v2816_v37 = vmax.f32 %v2784_v49, 0.0  ;;  %v2785_v44 = vadd.f32 %v5159_v15, %v2746_v4  ;;  %v3717_v33 = vpop.f32.mrb[30].mxu1 }
 0x225   : > { %v3383_v35 = vpack.c.bf16 %v4197_v12, %v4197_v12  ;;  %v4198_v2 = vround.rtne.f32 %v2907_v16  ;;  %v2814_v60 = vmax.f32 %v2782_v5, 0.0  ;;  %v2783_v19 = vadd.f32 %v5159_v15, %v2744_v28  ;;  %v1836_v21 = vpop.f32.mrb[31].mxu1 }
 0x226   : > { %3101 = vst.msk [vmem:[%s5180_s16 + $0x58] sm:$0xf] %vm3078_vm4, %v3385_v3  ;;  %v3386_v40 = vpack.c.bf16 %v4200_v42, %v4200_v42  ;;  %v2848_v53 = vmax.f32 %v2816_v37, 0.0  ;;  %v2817_v41 = vmax.f32 %v2785_v44, 0.0  ;;  %v3884_v31 = vadd.f32 %v3852_v6, %v3716_v63 }
 0x227   : > { %3099 = vst.msk [vmem:[%s5180_s16 + $0x50] sm:$0xf] %vm3078_vm4, %v3383_v35  ;;  %v3384_v58 = vpack.c.bf16 %v4198_v2, %v4198_v2  ;;  %v2846_v24 = vmax.f32 %v2814_v60, 0.0  ;;  %v2815_v38 = vmax.f32 %v2783_v19, 0.0  ;;  %v3885_v34 = vadd.f32 %v2665_v7, %v1833_v46 }
 0x228   : > { %3102 = vst.msk [vmem:[%s5180_s16 + $0x5c] sm:$0xf] %vm3078_vm4, %v3386_v40  ;;  %v2880_v48 = vmin.f32 %v2848_v53, 1.0  ;;  %v2849_v27 = vmax.f32 %v2817_v41, 0.0  ;;  %v2749_v55 = vmul.f32 %v3884_v31, %v5154_v51  ;;  %v3886_v54 = vadd.f32 %v3853_v23, %v3717_v33 }
 0x229   : > { %3100 = vst.msk [vmem:[%s5180_s16 + $0x54] sm:$0xf] %vm3078_vm4, %v3384_v58  ;;  %v2878_v11 = vmin.f32 %v2846_v24, 1.0  ;;  %v2847_v20 = vmax.f32 %v2815_v38, 0.0  ;;  %v2747_v1 = vmul.f32 %v3885_v34, %v5154_v51  ;;  %v3887_v61 = vadd.f32 %v2668_v18, %v1836_v21 }
 0x22a   : > { %v2912_v56 = vmul.f32 15.0, %v2880_v48  ;;  %v2881_v13 = vmin.f32 %v2849_v27, 1.0  ;;  %v2788_v25 = vadd.f32 %v5159_v15, %v2749_v55  ;;  %v2750_v14 = vmul.f32 %v3886_v54, %v5154_v51 }
 0x22b   : > { %v2910_v32 = vmul.f32 15.0, %v2878_v11  ;;  %v2879_v10 = vmin.f32 %v2847_v20, 1.0  ;;  %v2786_v39 = vadd.f32 %v5159_v15, %v2747_v1  ;;  %v2748_v22 = vmul.f32 %v3887_v61, %v5154_v51 }
 0x22c   : > { %v4203_v36 = vround.rtne.f32 %v2912_v56  ;;  %v2913_v43 = vmul.f32 15.0, %v2881_v13  ;;  %v2820_v6 = vmax.f32 %v2788_v25, 0.0  ;;  %v2789_v17 = vadd.f32 %v5159_v15, %v2750_v14 }
 0x22d   : > { %v4201_v30 = vround.rtne.f32 %v2910_v32  ;;  %v2911_v59 = vmul.f32 15.0, %v2879_v10  ;;  %v2818_v26 = vmax.f32 %v2786_v39, 0.0  ;;  %v2787_v7 = vadd.f32 %v5159_v15, %v2748_v22 }
 0x22e   : > { %v3389_v57 = vpack.c.bf16 %v4203_v36, %v4203_v36  ;;  %v4204_v50 = vround.rtne.f32 %v2913_v43  ;;  %v2852_v9 = vmax.f32 %v2820_v6, 0.0  ;;  %v2821_v52 = vmax.f32 %v2789_v17, 0.0 }
 0x22f   : > { %v3387_v23 = vpack.c.bf16 %v4201_v30, %v4201_v30  ;;  %v4202_v51 = vround.rtne.f32 %v2911_v59  ;;  %v2850_v29 = vmax.f32 %v2818_v26, 0.0  ;;  %v2819_v8 = vmax.f32 %v2787_v7, 0.0 }
 0x230   : > { %3105 = vst.msk [vmem:[%s5180_s16 + $0x68] sm:$0xf] %vm3078_vm4, %v3389_v57  ;;  %v3390_v45 = vpack.c.bf16 %v4204_v50, %v4204_v50  ;;  %v2884_v47 = vmin.f32 %v2852_v9, 1.0  ;;  %v2853_v18 = vmax.f32 %v2821_v52, 0.0 }
 0x231   : > { %3103 = vst.msk [vmem:[%s5180_s16 + $0x60] sm:$0xf] %vm3078_vm4, %v3387_v23  ;;  %v3388_v62 = vpack.c.bf16 %v4202_v51, %v4202_v51  ;;  %v2882_v0 = vmin.f32 %v2850_v29, 1.0  ;;  %v2851_v15 = vmax.f32 %v2819_v8, 0.0 }
 0x232   : > { %3106 = vst.msk [vmem:[%s5180_s16 + $0x6c] sm:$0xf] %vm3078_vm4, %v3390_v45  ;;  %v2916_v49 = vmul.f32 15.0, %v2884_v47  ;;  %v2885_v4 = vmin.f32 %v2853_v18, 1.0 }
 0x233   : > { %3104 = vst.msk [vmem:[%s5180_s16 + $0x64] sm:$0xf] %vm3078_vm4, %v3388_v62  ;;  %v2914_v12 = vmul.f32 15.0, %v2882_v0  ;;  %v2883_v16 = vmin.f32 %v2851_v15, 1.0 }
 0x234   : > { %v4207_v5 = vround.rtne.f32 %v2916_v49  ;;  %v2917_v28 = vmul.f32 15.0, %v2885_v4 }
 0x235   : > { %v4205_v63 = vround.rtne.f32 %v2914_v12  ;;  %v2915_v3 = vmul.f32 15.0, %v2883_v16 }
 0x236   : > { %v3393_v42 = vpack.c.bf16 %v4207_v5, %v4207_v5  ;;  %v4208_v37 = vround.rtne.f32 %v2917_v28 }
 0x237   : > { %v3391_v44 = vpack.c.bf16 %v4205_v63, %v4205_v63  ;;  %v4206_v46 = vround.rtne.f32 %v2915_v3 }
 0x238   : > { %3109 = vst.msk [vmem:[%s5180_s16 + $0x78] sm:$0xf] %vm3078_vm4, %v3393_v42  ;;  %v3394_v35 = vpack.c.bf16 %v4208_v37, %v4208_v37 }
 0x239   : > { %3107 = vst.msk [vmem:[%s5180_s16 + $0x70] sm:$0xf] %vm3078_vm4, %v3391_v44  ;;  %v3392_v2 = vpack.c.bf16 %v4206_v46, %v4206_v46 }
 0x23a   : > { %3110 = vst.msk [vmem:[%s5180_s16 + $0x7c] sm:$0xf] %vm3078_vm4, %v3394_v35 }
 0x23b   : > { %3108 = vst.msk [vmem:[%s5180_s16 + $0x74] sm:$0xf] %vm3078_vm4, %v3392_v2 }
 0x23c PF: > { %s14_s15 = sadd.s32 1, %s4224_s15  }
 0x23d   : > { %p11_p4 = scmp.ge.s32.totalorder %s14_s15, 4  }
 0x23f   :  { %13 = sbr.rel (!%p11_p4) target bundleno = 1 (0x1), region = 74 }

</bundles_post_ra>
